<compile_context>
chip_gen: v7x
topology: tpu7x:2x2x1
jax: 0.10.0
libtpu: 0.0.40
codegen_flags: <defaults>
</compile_context>

<pallas_src>
import math
import functools

import jax
import jax.numpy as jnp
from jax.experimental import pallas as pl
from jax.experimental.pallas import tpu as pltpu


def _mod_mlp_kernel(num_mid,
                    xT_ref, benc_ref,
                    wUc_ref, wUs_ref, bU_ref,
                    wVc_ref, wVs_ref, bV_ref,
                    wH0c_ref, wH0s_ref, bH0_ref,
                    *rest):
    """rest = [wH1, bH1, ..., wH_{num_mid}, bH_{num_mid}, w_last, b_last, out_ref].

    Feature-major layout: activations are (features, tile_m), batch on lanes.
    """
    out_ref = rest[-1]
    wL_ref, bL_ref = rest[-3], rest[-2]
    mid_refs = rest[:-3]

    # Gaussian Fourier features: v = 2*pi * B @ x^T, computed as a VPU broadcast
    # outer product ((enc_pad,1) * (1,tile_m)) instead of a K=1 MXU matmul.
    v = (2.0 * math.pi) * benc_ref[...] * xT_ref[...]          # (enc_pad, tile_m)
    cos_v = jnp.cos(v)
    sin_v = jnp.sin(v)

    def fourier_linear(wc_ref, ws_ref, b_ref):
        # W @ [cos; sin] + b == W_cos @ cos + W_sin @ sin + b   (no concatenate)
        return (jnp.dot(wc_ref[...], cos_v, preferred_element_type=jnp.float32)
                + jnp.dot(ws_ref[...], sin_v, preferred_element_type=jnp.float32)
                + b_ref[...])

    U = jnp.tanh(fourier_linear(wUc_ref, wUs_ref, bU_ref))        # (h1, tile_m)
    D = jnp.tanh(fourier_linear(wVc_ref, wVs_ref, bV_ref)) - U    # D = V - U

    # First gated hidden layer consumes the Fourier features.
    Z = jnp.tanh(fourier_linear(wH0c_ref, wH0s_ref, bH0_ref))
    cur = U + Z * D                                               # == (1-Z)*U + Z*V

    # Remaining gated hidden layers consume the running activation.
    for i in range(num_mid):
        w = mid_refs[2 * i][...]
        b = mid_refs[2 * i + 1][...]
        Z = jnp.tanh(jnp.dot(w, cur, preferred_element_type=jnp.float32) + b)
        cur = U + Z * D

    # Final linear projection (no activation); output block is lane-dense.
    out_ref[...] = (jnp.dot(wL_ref[...], cur, preferred_element_type=jnp.float32)
                    + bL_ref[...]).astype(out_ref.dtype)


def modified_mlp_block(x, b_enc, params, *, tile_m=128):
    """x: (N, 1) f32.  b_enc: (encoded_size, 1).  params: dict with
    'wU','bU','wV','bV' and 'hs' = [(wH_i, bH_i), ...] in PyTorch (out, in) layout."""
    x = jnp.asarray(x, jnp.float32)
    N = x.shape[0]
    assert N % tile_m == 0, "batch must be a multiple of tile_m"
    hs = params["hs"]
    assert len(hs) >= 2, "need >=1 gated hidden layer plus the output layer"
    num_mid = len(hs) - 2
    d_out = hs[-1][0].shape[0]

    enc = b_enc.shape[0]
    enc_pad = ((enc + 63) // 64) * 64    # 50 -> 64, lane/sublane aligned

    f32 = lambda a: jnp.asarray(a, jnp.float32)
    col = lambda b: f32(b).reshape(-1, 1)                 # (out,) -> (out, 1)

    def split_fourier_weight(w):
        # (out, 2*enc) -> cos half / sin half, zero-padded along in-features.
        w = f32(w)
        pad = enc_pad - enc
        wc = jnp.pad(w[:, :enc], ((0, 0), (0, pad)))
        ws = jnp.pad(w[:, enc:], ((0, 0), (0, pad)))
        return wc, ws

    benc_pad = jnp.pad(f32(b_enc), ((0, enc_pad - enc), (0, 0)))   # (enc_pad, 1)

    wUc, wUs = split_fourier_weight(params["wU"])
    wVc, wVs = split_fourier_weight(params["wV"])
    wH0c, wH0s = split_fourier_weight(hs[0][0])

    flat = [benc_pad,
            wUc, wUs, col(params["bU"]),
            wVc, wVs, col(params["bV"]),
            wH0c, wH0s, col(hs[0][1])]
    for (w, b) in hs[1:-1]:
        flat += [f32(w), col(b)]
    flat += [f32(hs[-1][0]), col(hs[-1][1])]

    xT = x.reshape(1, N)    # batch on the lane axis -> lane-dense input blocks

    def full_spec(a):
        return pl.BlockSpec(a.shape, lambda i: (0, 0))    # resident, fetched once

    grid = (N // tile_m,)
    in_specs = [pl.BlockSpec((1, tile_m), lambda i: (0, i))]
    in_specs += [full_spec(a) for a in flat]
    out_specs = pl.BlockSpec((d_out, tile_m), lambda i: (0, i))

    kernel = functools.partial(_mod_mlp_kernel, num_mid)
    outT = pl.pallas_call(
        kernel,
        out_shape=jax.ShapeDtypeStruct((d_out, N), jnp.float32),
        grid=grid,
        in_specs=in_specs,
        out_specs=out_specs,
        compiler_params=pltpu.CompilerParams(
            dimension_semantics=("parallel",)),
    )(xT, *flat)
    return outT.T                                          # (N, d_out)


# ---------------- deterministic parameter construction (synthetic) ----------------

def xavier_uniform(key, out_f, in_f):
    bound = math.sqrt(6.0 / (in_f + out_f))
    return jax.random.uniform(key, (out_f, in_f), jnp.float32, -bound, bound)


def linear_bias(key, out_f, in_f):
    bound = 1.0 / math.sqrt(in_f)
    return jax.random.uniform(key, (out_f,), jnp.float32, -bound, bound)


if __name__ == "__main__":
    sigma = 1.0
    encoded_size = 50                             # rff.GaussianEncoding(input_size=1, encoded_size=50)
    layers_size = [2 * encoded_size, 64, 64, 1]   # layers_size[0] must be 100 (cos||sin)
    N = 256

    key = jax.random.PRNGKey(0)
    keys = jax.random.split(key, 16)

    # GaussianEncoding B ~ N(0, sigma^2), shape (encoded_size, input_size=1)
    b_enc = sigma * jax.random.normal(keys[0], (encoded_size, 1), jnp.float32)

    wU = xavier_uniform(keys[1], layers_size[1], layers_size[0])
    bU = linear_bias(keys[2], layers_size[1], layers_size[0])
    wV = xavier_uniform(keys[3], layers_size[1], layers_size[0])
    bV = linear_bias(keys[4], layers_size[1], layers_size[0])

    hs = []
    ki = 5
    for i in range(len(layers_size) - 1):
        w = xavier_uniform(keys[ki], layers_size[i + 1], layers_size[i]); ki += 1
        b = linear_bias(keys[ki], layers_size[i + 1], layers_size[i]); ki += 1
        hs.append((w, b))

    params = dict(wU=wU, bU=bU, wV=wV, bV=bV, hs=hs)
    x = jax.random.uniform(keys[ki], (N, 1), jnp.float32, minval=-1.0, maxval=1.0)

    out = modified_mlp_block(x, b_enc, params, tile_m=128)
    out = jax.block_until_ready(out)

    # Pure-JAX reference with identical semantics (sanity check).
    def ref(xx):
        v = 2.0 * math.pi * xx @ b_enc.T
        feat = jnp.concatenate([jnp.cos(v), jnp.sin(v)], axis=-1)
        Uf = jnp.tanh(feat @ wU.T + bU)
        Vf = jnp.tanh(feat @ wV.T + bV)
        cur = feat
        for (w, b) in hs[:-1]:
            Z = jnp.tanh(cur @ w.T + b)
            cur = (1.0 - Z) * Uf + Z * Vf
        return cur @ hs[-1][0].T + hs[-1][1]

    r = ref(x)
    assert out.shape == (N, layers_size[-1])
    assert jnp.allclose(out, r, atol=1e-4, rtol=1e-4), "mismatch vs reference"
    print("KERNEL_OK")
</pallas_src>

<mosaic_0001>
module attributes {stable_mosaic.version = 11 : i64} {
  func.func @_mod_mlp_kernel(%arg0: i32, %arg1: memref<1x128xf32, #tpu.memory_space<vmem>>, %arg2: memref<64x1xf32, #tpu.memory_space<vmem>>, %arg3: memref<64x64xf32, #tpu.memory_space<vmem>>, %arg4: memref<64x64xf32, #tpu.memory_space<vmem>>, %arg5: memref<64x1xf32, #tpu.memory_space<vmem>>, %arg6: memref<64x64xf32, #tpu.memory_space<vmem>>, %arg7: memref<64x64xf32, #tpu.memory_space<vmem>>, %arg8: memref<64x1xf32, #tpu.memory_space<vmem>>, %arg9: memref<64x64xf32, #tpu.memory_space<vmem>>, %arg10: memref<64x64xf32, #tpu.memory_space<vmem>>, %arg11: memref<64x1xf32, #tpu.memory_space<vmem>>, %arg12: memref<64x64xf32, #tpu.memory_space<vmem>>, %arg13: memref<64x1xf32, #tpu.memory_space<vmem>>, %arg14: memref<1x64xf32, #tpu.memory_space<vmem>>, %arg15: memref<1x1xf32, #tpu.memory_space<vmem>>, %arg16: memref<1x128xf32, #tpu.memory_space<vmem>>) attributes {dimension_semantics = [#tpu.dimension_semantics<parallel>], iteration_bounds = array<i64: 2>, scalar_prefetch = 0 : i64, scratch_operands = 0 : i64, tpu.core_type = #tpu.core_type<tc>, window_params = [{transform_indices = @transform_0, window_bounds = array<i64: 1, 128>}, {pipeline_mode = #tpu.pipeline_mode<synchronous>, transform_indices = @transform_1, window_bounds = array<i64: 64, 1>}, {pipeline_mode = #tpu.pipeline_mode<synchronous>, transform_indices = @transform_2, window_bounds = array<i64: 64, 64>}, {pipeline_mode = #tpu.pipeline_mode<synchronous>, transform_indices = @transform_3, window_bounds = array<i64: 64, 64>}, {pipeline_mode = #tpu.pipeline_mode<synchronous>, transform_indices = @transform_4, window_bounds = array<i64: 64, 1>}, {pipeline_mode = #tpu.pipeline_mode<synchronous>, transform_indices = @transform_5, window_bounds = array<i64: 64, 64>}, {pipeline_mode = #tpu.pipeline_mode<synchronous>, transform_indices = @transform_6, window_bounds = array<i64: 64, 64>}, {pipeline_mode = #tpu.pipeline_mode<synchronous>, transform_indices = @transform_7, window_bounds = array<i64: 64, 1>}, {pipeline_mode = #tpu.pipeline_mode<synchronous>, transform_indices = @transform_8, window_bounds = array<i64: 64, 64>}, {pipeline_mode = #tpu.pipeline_mode<synchronous>, transform_indices = @transform_9, window_bounds = array<i64: 64, 64>}, {pipeline_mode = #tpu.pipeline_mode<synchronous>, transform_indices = @transform_10, window_bounds = array<i64: 64, 1>}, {pipeline_mode = #tpu.pipeline_mode<synchronous>, transform_indices = @transform_11, window_bounds = array<i64: 64, 64>}, {pipeline_mode = #tpu.pipeline_mode<synchronous>, transform_indices = @transform_12, window_bounds = array<i64: 64, 1>}, {pipeline_mode = #tpu.pipeline_mode<synchronous>, transform_indices = @transform_13, window_bounds = array<i64: 1, 64>}, {pipeline_mode = #tpu.pipeline_mode<synchronous>, transform_indices = @transform_14, window_bounds = array<i64: 1, 1>}, {transform_indices = @transform_15, window_bounds = array<i64: 1, 128>}]} {
    %c0 = arith.constant 0 : index
    %c0_0 = arith.constant 0 : index
    %0 = vector.load %arg2[%c0, %c0_0] : memref<64x1xf32, #tpu.memory_space<vmem>>, vector<64x1xf32>
    %cst = arith.constant 6.28318548 : f32
    %1 = vector.broadcast %cst : f32 to vector<64x1xf32>
    %2 = arith.mulf %1, %0 : vector<64x1xf32>
    %c0_1 = arith.constant 0 : index
    %c0_2 = arith.constant 0 : index
    %3 = vector.load %arg1[%c0_1, %c0_2] : memref<1x128xf32, #tpu.memory_space<vmem>>, vector<1x128xf32>
    %4 = vector.broadcast %2 : vector<64x1xf32> to vector<64x128xf32>
    %5 = vector.broadcast %3 : vector<1x128xf32> to vector<64x128xf32>
    %6 = arith.mulf %4, %5 : vector<64x128xf32>
    %7 = math.cos %6 : vector<64x128xf32>
    %8 = math.sin %6 : vector<64x128xf32>
    %c0_3 = arith.constant 0 : index
    %c0_4 = arith.constant 0 : index
    %9 = vector.load %arg3[%c0_3, %c0_4] : memref<64x64xf32, #tpu.memory_space<vmem>>, vector<64x64xf32>
    %cst_5 = arith.constant dense<0.000000e+00> : vector<64x128xf32>
    %10 = tpu.matmul %9, %7, %cst_5 {dimension_numbers = #tpu.dot_dimension_numbers<[1], [0], [0], [1], [0, 0, 1, 1], [], []>} : vector<64x64xf32>, vector<64x128xf32>, vector<64x128xf32> -> vector<64x128xf32>
    %c0_6 = arith.constant 0 : index
    %c0_7 = arith.constant 0 : index
    %11 = vector.load %arg4[%c0_6, %c0_7] : memref<64x64xf32, #tpu.memory_space<vmem>>, vector<64x64xf32>
    %cst_8 = arith.constant dense<0.000000e+00> : vector<64x128xf32>
    %12 = tpu.matmul %11, %8, %cst_8 {dimension_numbers = #tpu.dot_dimension_numbers<[1], [0], [0], [1], [0, 0, 1, 1], [], []>} : vector<64x64xf32>, vector<64x128xf32>, vector<64x128xf32> -> vector<64x128xf32>
    %13 = arith.addf %10, %12 : vector<64x128xf32>
    %c0_9 = arith.constant 0 : index
    %c0_10 = arith.constant 0 : index
    %14 = vector.load %arg5[%c0_9, %c0_10] : memref<64x1xf32, #tpu.memory_space<vmem>>, vector<64x1xf32>
    %15 = vector.broadcast %14 : vector<64x1xf32> to vector<64x128xf32>
    %16 = arith.addf %13, %15 : vector<64x128xf32>
    %17 = math.tanh %16 : vector<64x128xf32>
    %c0_11 = arith.constant 0 : index
    %c0_12 = arith.constant 0 : index
    %18 = vector.load %arg6[%c0_11, %c0_12] : memref<64x64xf32, #tpu.memory_space<vmem>>, vector<64x64xf32>
    %cst_13 = arith.constant dense<0.000000e+00> : vector<64x128xf32>
    %19 = tpu.matmul %18, %7, %cst_13 {dimension_numbers = #tpu.dot_dimension_numbers<[1], [0], [0], [1], [0, 0, 1, 1], [], []>} : vector<64x64xf32>, vector<64x128xf32>, vector<64x128xf32> -> vector<64x128xf32>
    %c0_14 = arith.constant 0 : index
    %c0_15 = arith.constant 0 : index
    %20 = vector.load %arg7[%c0_14, %c0_15] : memref<64x64xf32, #tpu.memory_space<vmem>>, vector<64x64xf32>
    %cst_16 = arith.constant dense<0.000000e+00> : vector<64x128xf32>
    %21 = tpu.matmul %20, %8, %cst_16 {dimension_numbers = #tpu.dot_dimension_numbers<[1], [0], [0], [1], [0, 0, 1, 1], [], []>} : vector<64x64xf32>, vector<64x128xf32>, vector<64x128xf32> -> vector<64x128xf32>
    %22 = arith.addf %19, %21 : vector<64x128xf32>
    %c0_17 = arith.constant 0 : index
    %c0_18 = arith.constant 0 : index
    %23 = vector.load %arg8[%c0_17, %c0_18] : memref<64x1xf32, #tpu.memory_space<vmem>>, vector<64x1xf32>
    %24 = vector.broadcast %23 : vector<64x1xf32> to vector<64x128xf32>
    %25 = arith.addf %22, %24 : vector<64x128xf32>
    %26 = math.tanh %25 : vector<64x128xf32>
    %27 = arith.subf %26, %17 : vector<64x128xf32>
    %c0_19 = arith.constant 0 : index
    %c0_20 = arith.constant 0 : index
    %28 = vector.load %arg9[%c0_19, %c0_20] : memref<64x64xf32, #tpu.memory_space<vmem>>, vector<64x64xf32>
    %cst_21 = arith.constant dense<0.000000e+00> : vector<64x128xf32>
    %29 = tpu.matmul %28, %7, %cst_21 {dimension_numbers = #tpu.dot_dimension_numbers<[1], [0], [0], [1], [0, 0, 1, 1], [], []>} : vector<64x64xf32>, vector<64x128xf32>, vector<64x128xf32> -> vector<64x128xf32>
    %c0_22 = arith.constant 0 : index
    %c0_23 = arith.constant 0 : index
    %30 = vector.load %arg10[%c0_22, %c0_23] : memref<64x64xf32, #tpu.memory_space<vmem>>, vector<64x64xf32>
    %cst_24 = arith.constant dense<0.000000e+00> : vector<64x128xf32>
    %31 = tpu.matmul %30, %8, %cst_24 {dimension_numbers = #tpu.dot_dimension_numbers<[1], [0], [0], [1], [0, 0, 1, 1], [], []>} : vector<64x64xf32>, vector<64x128xf32>, vector<64x128xf32> -> vector<64x128xf32>
    %32 = arith.addf %29, %31 : vector<64x128xf32>
    %c0_25 = arith.constant 0 : index
    %c0_26 = arith.constant 0 : index
    %33 = vector.load %arg11[%c0_25, %c0_26] : memref<64x1xf32, #tpu.memory_space<vmem>>, vector<64x1xf32>
    %34 = vector.broadcast %33 : vector<64x1xf32> to vector<64x128xf32>
    %35 = arith.addf %32, %34 : vector<64x128xf32>
    %36 = math.tanh %35 : vector<64x128xf32>
    %37 = arith.mulf %36, %27 : vector<64x128xf32>
    %38 = arith.addf %17, %37 : vector<64x128xf32>
    %c0_27 = arith.constant 0 : index
    %c0_28 = arith.constant 0 : index
    %39 = vector.load %arg12[%c0_27, %c0_28] : memref<64x64xf32, #tpu.memory_space<vmem>>, vector<64x64xf32>
    %c0_29 = arith.constant 0 : index
    %c0_30 = arith.constant 0 : index
    %40 = vector.load %arg13[%c0_29, %c0_30] : memref<64x1xf32, #tpu.memory_space<vmem>>, vector<64x1xf32>
    %cst_31 = arith.constant dense<0.000000e+00> : vector<64x128xf32>
    %41 = tpu.matmul %39, %38, %cst_31 {dimension_numbers = #tpu.dot_dimension_numbers<[1], [0], [0], [1], [0, 0, 1, 1], [], []>} : vector<64x64xf32>, vector<64x128xf32>, vector<64x128xf32> -> vector<64x128xf32>
    %42 = vector.broadcast %40 : vector<64x1xf32> to vector<64x128xf32>
    %43 = arith.addf %41, %42 : vector<64x128xf32>
    %44 = math.tanh %43 : vector<64x128xf32>
    %45 = arith.mulf %44, %27 : vector<64x128xf32>
    %46 = arith.addf %17, %45 : vector<64x128xf32>
    %c0_32 = arith.constant 0 : index
    %c0_33 = arith.constant 0 : index
    %47 = vector.load %arg14[%c0_32, %c0_33] : memref<1x64xf32, #tpu.memory_space<vmem>>, vector<1x64xf32>
    %cst_34 = arith.constant dense<0.000000e+00> : vector<1x128xf32>
    %48 = tpu.matmul %47, %46, %cst_34 {dimension_numbers = #tpu.dot_dimension_numbers<[1], [0], [0], [1], [0, 0, 1, 1], [], []>} : vector<1x64xf32>, vector<64x128xf32>, vector<1x128xf32> -> vector<1x128xf32>
    %c0_35 = arith.constant 0 : index
    %c0_36 = arith.constant 0 : index
    %49 = vector.load %arg15[%c0_35, %c0_36] : memref<1x1xf32, #tpu.memory_space<vmem>>, vector<1x1xf32>
    %50 = vector.broadcast %49 : vector<1x1xf32> to vector<1x128xf32>
    %51 = arith.addf %48, %50 : vector<1x128xf32>
    %c0_37 = arith.constant 0 : index
    %c0_38 = arith.constant 0 : index
    %52 = vector.load %arg16[%c0_37, %c0_38] : memref<1x128xf32, #tpu.memory_space<vmem>>, vector<1x128xf32>
    tpu.vector_store %arg16[%c0_37, %c0_38], %51 {strides = array<i32>} : memref<1x128xf32, #tpu.memory_space<vmem>>, vector<1x128xf32>,
    return
  }
  func.func @transform_0(%arg0: i32) -> (i32, i32) {
    %c0_i32 = arith.constant 0 : i32
    %c0_i32_0 = arith.constant 0 : i32
    return %c0_i32, %arg0 : i32, i32
  }
  func.func @transform_1(%arg0: i32) -> (i32, i32) {
    %c0_i32 = arith.constant 0 : i32
    %c0_i32_0 = arith.constant 0 : i32
    %c0_i32_1 = arith.constant 0 : i32
    return %c0_i32, %c0_i32_0 : i32, i32
  }
  func.func @transform_2(%arg0: i32) -> (i32, i32) {
    %c0_i32 = arith.constant 0 : i32
    %c0_i32_0 = arith.constant 0 : i32
    %c0_i32_1 = arith.constant 0 : i32
    return %c0_i32, %c0_i32_0 : i32, i32
  }
  func.func @transform_3(%arg0: i32) -> (i32, i32) {
    %c0_i32 = arith.constant 0 : i32
    %c0_i32_0 = arith.constant 0 : i32
    %c0_i32_1 = arith.constant 0 : i32
    return %c0_i32, %c0_i32_0 : i32, i32
  }
  func.func @transform_4(%arg0: i32) -> (i32, i32) {
    %c0_i32 = arith.constant 0 : i32
    %c0_i32_0 = arith.constant 0 : i32
    %c0_i32_1 = arith.constant 0 : i32
    return %c0_i32, %c0_i32_0 : i32, i32
  }
  func.func @transform_5(%arg0: i32) -> (i32, i32) {
    %c0_i32 = arith.constant 0 : i32
    %c0_i32_0 = arith.constant 0 : i32
    %c0_i32_1 = arith.constant 0 : i32
    return %c0_i32, %c0_i32_0 : i32, i32
  }
  func.func @transform_6(%arg0: i32) -> (i32, i32) {
    %c0_i32 = arith.constant 0 : i32
    %c0_i32_0 = arith.constant 0 : i32
    %c0_i32_1 = arith.constant 0 : i32
    return %c0_i32, %c0_i32_0 : i32, i32
  }
  func.func @transform_7(%arg0: i32) -> (i32, i32) {
    %c0_i32 = arith.constant 0 : i32
    %c0_i32_0 = arith.constant 0 : i32
    %c0_i32_1 = arith.constant 0 : i32
    return %c0_i32, %c0_i32_0 : i32, i32
  }
  func.func @transform_8(%arg0: i32) -> (i32, i32) {
    %c0_i32 = arith.constant 0 : i32
    %c0_i32_0 = arith.constant 0 : i32
    %c0_i32_1 = arith.constant 0 : i32
    return %c0_i32, %c0_i32_0 : i32, i32
  }
  func.func @transform_9(%arg0: i32) -> (i32, i32) {
    %c0_i32 = arith.constant 0 : i32
    %c0_i32_0 = arith.constant 0 : i32
    %c0_i32_1 = arith.constant 0 : i32
    return %c0_i32, %c0_i32_0 : i32, i32
  }
  func.func @transform_10(%arg0: i32) -> (i32, i32) {
    %c0_i32 = arith.constant 0 : i32
    %c0_i32_0 = arith.constant 0 : i32
    %c0_i32_1 = arith.constant 0 : i32
    return %c0_i32, %c0_i32_0 : i32, i32
  }
  func.func @transform_11(%arg0: i32) -> (i32, i32) {
    %c0_i32 = arith.constant 0 : i32
    %c0_i32_0 = arith.constant 0 : i32
    %c0_i32_1 = arith.constant 0 : i32
    return %c0_i32, %c0_i32_0 : i32, i32
  }
  func.func @transform_12(%arg0: i32) -> (i32, i32) {
    %c0_i32 = arith.constant 0 : i32
    %c0_i32_0 = arith.constant 0 : i32
    %c0_i32_1 = arith.constant 0 : i32
    return %c0_i32, %c0_i32_0 : i32, i32
  }
  func.func @transform_13(%arg0: i32) -> (i32, i32) {
    %c0_i32 = arith.constant 0 : i32
    %c0_i32_0 = arith.constant 0 : i32
    %c0_i32_1 = arith.constant 0 : i32
    return %c0_i32, %c0_i32_0 : i32, i32
  }
  func.func @transform_14(%arg0: i32) -> (i32, i32) {
    %c0_i32 = arith.constant 0 : i32
    %c0_i32_0 = arith.constant 0 : i32
    %c0_i32_1 = arith.constant 0 : i32
    return %c0_i32, %c0_i32_0 : i32, i32
  }
  func.func @transform_15(%arg0: i32) -> (i32, i32) {
    %c0_i32 = arith.constant 0 : i32
    %c0_i32_0 = arith.constant 0 : i32
    return %c0_i32, %arg0 : i32, i32
  }
}

</mosaic_0001>

<bundles_post_ra>
// kernel: tpu_custom_call.1
= control target key start
LH: loop header
LB: loop body
LE: loop exit
PB: predicated region body
PF: predicated region fallthrough
CT: control target
= control target key end

     0   :  { %s6148_s0 = inlined_call_operand.vmem [shape: f32[1,256], index: 0, kind: input, shape index: {}]   ;;  %s6149_s1 = inlined_call_operand.vmem [shape: f32[64,1], index: 1, kind: input, shape index: {}]   ;;  %s6150_s2 = inlined_call_operand.vmem [shape: f32[64,64], index: 2, kind: input, shape index: {}]   ;;  %s6151_s3 = inlined_call_operand.vmem [shape: f32[64,64], index: 3, kind: input, shape index: {}]   ;;  %s6152_s4 = inlined_call_operand.vmem [shape: f32[64,1], index: 4, kind: input, shape index: {}]   ;;  %s6153_s5 = inlined_call_operand.vmem [shape: f32[64,64], index: 5, kind: input, shape index: {}]   ;;  %s6154_s6 = inlined_call_operand.vmem [shape: f32[64,64], index: 6, kind: input, shape index: {}]   ;;  %s6155_s7 = inlined_call_operand.vmem [shape: f32[64,1], index: 7, kind: input, shape index: {}]   ;;  %s6156_s8 = inlined_call_operand.vmem [shape: f32[64,64], index: 8, kind: input, shape index: {}]   ;;  %s6157_s9 = inlined_call_operand.hbm [shape: f32[64,64], index: 9, kind: input, shape index: {}]   ;;  %s6158_s10 = inlined_call_operand.vmem [shape: f32[64,1], index: 10, kind: input, shape index: {}]   ;;  %s6159_s11 = inlined_call_operand.hbm [shape: f32[64,64], index: 11, kind: input, shape index: {}]   ;;  %s6160_s12 = inlined_call_operand.vmem [shape: f32[64,1], index: 12, kind: input, shape index: {}]   ;;  %s6161_s13 = inlined_call_operand.vmem [shape: f32[1,64], index: 13, kind: input, shape index: {}]   ;;  %s6162_s14 = inlined_call_operand.<no memory space> [shape: f32[1,1], index: 14, kind: input, shape index: {}]   ;;  %s6163_s15 = inlined_call_operand.hbm [shape: f32[1,256], index: 15, kind: output, shape index: {}]  }
   0x1   :  { %6176 = sst [smem:[#allocation19_spill]] %s6163_s15  ;;  %v20_v0 = vstv %s6162_s14 }
   0x2   :  { %21 = vst [vmem:[#allocation2] sm:$0x1] %v20_v0 }
   0x3   :  { %22 = vsyncpa [#allocation4], 0 }
   0x4   :  { %23 = vsyncpa [#allocation7], 0 }
   0x5   :  { %24 = vsyncpa [#allocation5], 0 }
   0x6   :  { %26 = vsyncpa [#allocation5 + $0x1], 0  ;;  %s4711_s20 = smov 0   ;;  %s4713_s21 = smov 0  }
   0x7   :  { %s4715_s22 = smov 0   ;;  %s4717_s23 = smov 0  }
   0x8 LB: > { %6177 = sst [smem:[#allocation12_spill]] %s4599_s20  ;;  %s4732_s14 = sadd.s32 4294967295, %s4611_s23   ;;  %s4611_s23 = sphi %s4717_s23, %s6214_s23   ;;  %s4607_s22 = sphi %s4715_s22, %s6216_s22   ;;  %s4603_s21 = sphi %s4713_s21, %s6218_s21   ;;  %s4599_s20 = sphi %s4711_s20, %s6217_s20  }
   0x9   : > { %6178 = sst [smem:[#allocation13_spill]] %s4607_s22  ;;  %s3665_s24 = sadd.s32 4294967294, %s4611_s23  }
   0xa   : > { %6179 = sst [smem:[#allocation14_spill]] %s4611_s23  ;;  %s4736_s25 = sadd.s32 1, %s4611_s23  }
   0xb   : > { %6180 = sst [smem:[#allocation15_spill]] %s4736_s25  ;;  %s359_s26 = sadd.s32 1, %s4607_s22 }
   0xc   : > { %s356_s27 = ssub.s32 %s4611_s23, %s4736_s25  ;;  %p369_p0 = scmp.ne.s32.totalorder %s4607_s22, %s4603_s21 }
   0xd   : > { %p357_p1 = scmp.eq.s32.totalorder %s356_s27, 0  ;;  %p370_p2 = scmp.eq.s32.totalorder %s4732_s14, 1 }
   0xe   : > { %p375_p3 = scmp.ne.s32.totalorder %s4603_s21, %s4599_s20  ;;  %p376_p4 = scmp.eq.s32.totalorder %s3665_s24, 1 }
   0xf   : > { %s4747_s28 = scalar_select %p357_p1, %s4607_s22, %s359_s26  }
  0x10   : > { %p4749_p5 = por %p370_p2, %p369_p0  ;;  %p4753_p6 = por %p376_p4, %p375_p3 }
  0x11   : > { %6181 = sst [smem:[#allocation16_spill]] %s4747_s28  ;;  %p3666_p7 = scmp.ge.s32.totalorder %s4611_s23, 1 }
  0x12   : > { %s6182_s29 = scalar_select %p4749_p5, 1, 0 }
  0x13   : > { %s6184_s30 = scalar_select %p4753_p6, 1, 0 }
  0x14   : > { %6183 = sst [smem:[#allocation17_spill]] %s6182_s29  ;;  %p383_p8 = scmp.lt.s32.totalorder %s4611_s23, 3 }
  0x15   : > { %6185 = sst [smem:[#allocation18_spill]] %s6184_s30  ;;  %p6169_p9 = scmp.eq.s32.totalorder %s4732_s14, 0 }
  0x16   : > { %p4760_p10 = pnand %p3666_p7, %p383_p8  ;;  %s4613_s17 = smov [#allocation3]  }
  0x17   : > { %s419_s18 = sshll.u32 %s4613_s17, 4  ;;  %s4614_s24 = smov [#allocation6]   ;;  %s420_s18 = int_to_ptr.vmem [resolvable:$true] %s419_s18 }
  0x18   : > { %s6186_s16 = scalar_select %p4760_p10, 1, 0 }
  0x19   : > { %p4324_p11 = pneg %p4760_p10  ;;  %s435_s26 = sshll.u32 %s4614_s24, 4  ;;  %s4772_s26 = int_to_ptr.vmem [resolvable:$true] %s435_s26 }
  0x1a   : > { %s4485_s22 = scalar_lea.hbm %s6157_s9, 1024 }
  0x1b   : > { %p4768_p12 = pnand %p6169_p9, %p4324_p11  ;;  %p4486_p13 = scmp.ne.s32.totalorder %s6157_s9, %s4485_s22 }
  0x1c   : > { %p4492_p3 = scmp.lt.u32.totalorder %s4485_s22, %s6157_s9 }
  0x1d   : > { %p4487_p0 = pneg %p4768_p12 }
  0x1f   : > { %p4488_p1 = pnand %p4487_p0, %p4486_p13 }
  0x21   : > { %p4489_p2 = pneg %p4488_p1 }
  0x23   : > { %p4494_p4 = pnand %p4492_p3, %p4489_p2 }
  0x25   : > { %4497 = shalt.err (!%p4494_p4)
}
  0x26   : > { %s4498_s24 = scalar_lea.vmem %s420_s18, 1024  ;;  %p4506_p9 = scmp.lt.s32.totalorder %s420_s18, %s420_s18 }
  0x27   : > { %p4499_p7 = scmp.ne.s32.totalorder %s420_s18, %s4498_s24  ;;  %p4507_p6 = scmp.lt.s32.totalorder %s4498_s24, %s4498_s24 }
  0x29   : > { %p4501_p8 = pnand %p4499_p7, %p4487_p0  ;;  %p4508_p5 = por %p4507_p6, %p4506_p9 }
  0x2b   : > { %p4502_p11 = pneg %p4501_p8 }
  0x2d   : > { %p4509_p10 = pnand %p4508_p5, %p4502_p11 }
  0x2f   : > { %4512 = shalt.err (!%p4509_p10)
}
  0x30   : > { %s4615_s25 = smov 128   ;;  %s4616_s28 = smov 8  }
  0x31   : > { %4327 = dma.hbm_to_vmem [thread:$0]  (!%p4768_p12), %s6157_s9, 1024, %s420_s18, [#allocation4], %s4615_s25, %s4615_s25, %s4616_s28  }
  0x32   : > { %s4513_s17 = scalar_lea.hbm %s6159_s11, 1024 }
  0x33   : > { %p4514_p13 = scmp.ne.s32.totalorder %s6159_s11, %s4513_s17  ;;  %p4520_p9 = scmp.lt.u32.totalorder %s4513_s17, %s6159_s11 }
  0x35   : > { %p4516_p5 = pnand %p4514_p13, %p4487_p0 }
  0x37   : > { %p4517_p6 = pneg %p4516_p5 }
  0x39   : > { %p4522_p10 = pnand %p4520_p9, %p4517_p6 }
  0x3b   : > { %4525 = shalt.err (!%p4522_p10)
}
  0x3c   : > { %s4526_s18 = scalar_lea.vmem %s4772_s26, 1024  ;;  %p4534_p4 = scmp.lt.s32.totalorder %s4772_s26, %s4772_s26 }
  0x3d   : > { %p4527_p1 = scmp.ne.s32.totalorder %s4772_s26, %s4526_s18  ;;  %p4535_p7 = scmp.lt.s32.totalorder %s4526_s18, %s4526_s18 }
  0x3f   : > { %p4529_p2 = pnand %p4527_p1, %p4487_p0  ;;  %p4536_p8 = por %p4535_p7, %p4534_p4 }
  0x41   : > { %p4530_p3 = pneg %p4529_p2 }
  0x43   : > { %p4537_p11 = pnand %p4536_p8, %p4530_p3 }
  0x45   : > { %4540 = shalt.err (!%p4537_p11)
}
  0x46   : > { %4330 = dma.hbm_to_vmem [thread:$0]  (!%p4768_p12), %s6159_s11, 1024, %s4772_s26, [#allocation7], %s4615_s25, %s4615_s25, %s4616_s28  }
  0x47   : > { %p6188_p13 = scmp.ne.s32.totalorder %s6186_s16, 0 }
  0x48   : > { %p6189_p5 = scmp.eq.s32.totalorder (!%p6188_p13), %s4732_s14, 0 }
  0x49   : > { %466 = sbr.rel (%p6188_p13) target bundleno = 1243 (0x4db), region = 80 }
  0x50   : > { %4586 = dma.done.wait (%p6189_p5), [#allocation4], 1024   ;;  %p6190_p0 = pmov %p6189_p5 }
  0x52   : > { %4588 = vsyncadd (%p6190_p0), [#allocation4], 4294966272  ;;  %p6191_p6 = pmov %p6190_p0 }
  0x53   : > { %p6192_p9 = pmov %p6190_p0 }
  0x54   : > { %4590 = dma.done.wait (%p6191_p6), [#allocation7], 1024  }
  0x55   : > { %4592 = vsyncadd (%p6192_p9), [#allocation7], 4294966272  ;;  %v4617_v1 = vmov 0   ;;  %v520_v2 = vld [vmem:[%s6149_s1 + $0x10] sm:$0xff]  ;;  %v518_v3 = vld [vmem:[%s6149_s1] sm:$0xff]  ;;  %p515_p12 = scmp.lt.s32.totalorder %s4732_s14, 1 }
  0x56   : > { %4387 = vset.pattern.permute.xlu1 %v4617_v1  ;;  %4386 = vset.pattern.permute.xlu0 %v4617_v1  ;;  %v521_v4 = vld [vmem:[%s6149_s1 + $0x18] sm:$0xff]  ;;  %v528_v5 = vmul.f32 6.2831855, %v520_v2  ;;  %v526_v6 = vmul.f32 6.2831855, %v518_v3  ;;  %v519_v7 = vld [vmem:[%s6149_s1 + $0x8] sm:$0xff] }
  0x57   : > { %v529_v8 = vmul.f32 6.2831855, %v521_v4  ;;  %v527_v9 = vmul.f32 6.2831855, %v519_v7  ;;  %v523_v10 = vld [vmem:[%s6149_s1 + $0x28] sm:$0xff]  ;;  %v522_v11 = vld [vmem:[%s6149_s1 + $0x20] sm:$0xff] }
  0x58   : > { %547 = vperm.xlu1 %4387, %v528_v5   ;;  %537 = vperm.xlu0 %4386, %v526_v6   ;;  %v531_v12 = vmul.f32 6.2831855, %v523_v10  ;;  %v530_v13 = vmul.f32 6.2831855, %v522_v11  ;;  %v525_v14 = vld [vmem:[%s6149_s1 + $0x38] sm:$0xff]  ;;  %v524_v15 = vld [vmem:[%s6149_s1 + $0x30] sm:$0xff] }
  0x59   : > { %v533_v16 = vmul.f32 6.2831855, %v525_v14  ;;  %v532_v17 = vmul.f32 6.2831855, %v524_v15  ;;  %v2521_v18 = vld [vmem:[%s6152_s4 + $0x8] sm:$0xff]  ;;  %v2520_v19 = vld [vmem:[%s6152_s4] sm:$0xff] }
  0x5a   : > { %v2859_v20 = vld [vmem:[%s6155_s7 + $0x8] sm:$0xff]  ;;  %v2858_v21 = vld [vmem:[%s6155_s7] sm:$0xff]  ;;  %v2523_v24 = vld [vmem:[%s6152_s4 + $0x18] sm:$0xff]  ;;  %s516_s28 = scalar_select %p515_p12, %s4732_s14, 1 }
  0x5b   : > { %v3205_v22 = vld [vmem:[%s6158_s10 + $0x8] sm:$0xff]  ;;  %v3204_v23 = vld [vmem:[%s6158_s10] sm:$0xff]  ;;  %v2522_v25 = vld [vmem:[%s6152_s4 + $0x10] sm:$0xff]  ;;  %s513_s19 = sand.u32 1, %s4603_s21   ;;  %s6207_s16 = sld [smem:[#allocation17_spill]] }
  0x5c   : > { %552 = vperm.xlu1 %4387, %v529_v8   ;;  %542 = vperm.xlu0 %4386, %v527_v9   ;;  %v2861_v26 = vld [vmem:[%s6155_s7 + $0x18] sm:$0xff]  ;;  %v2860_v27 = vld [vmem:[%s6155_s7 + $0x10] sm:$0xff]  ;;  %v2525_v30 = vld [vmem:[%s6152_s4 + $0x28] sm:$0xff]  ;;  %s4956_s30 = scalar_lea.vmem %s6148_s0, %s516_s28  ;;  %s3795_s26 = sshll.u32 %s4732_s14, 4 }
  0x5d   : > { %v3207_v28 = vld [vmem:[%s6158_s10 + $0x18] sm:$0xff]  ;;  %v3206_v29 = vld [vmem:[%s6158_s10 + $0x10] sm:$0xff]  ;;  %v2524_v31 = vld [vmem:[%s6152_s4 + $0x20] sm:$0xff]  ;;  %s514_s25 = scalar_lea.vmem [#allocation8], %s513_s19  ;;  %s3579_s17 = scalar_lea.sflag [#allocation5], %s513_s19 }
  0x5e   : > { %v2863_v32 = vld [vmem:[%s6155_s7 + $0x28] sm:$0xff]  ;;  %v2862_v33 = vld [vmem:[%s6155_s7 + $0x20] sm:$0xff]  ;;  %v2527_v36 = vld [vmem:[%s6152_s4 + $0x38] sm:$0xff]  ;;  %s3591_s28 = sshll.u32 %s514_s25, 4  ;;  %s4627_s14 = smov [#allocation8]   ;;  %s6108_s28 = int_to_ptr.vmem [resolvable:$true] %s3591_s28 }
  0x5f   : > { %v3209_v34 = vld [vmem:[%s6158_s10 + $0x28] sm:$0xff]  ;;  %v3208_v35 = vld [vmem:[%s6158_s10 + $0x20] sm:$0xff]  ;;  %v2526_v37 = vld [vmem:[%s6152_s4 + $0x30] sm:$0xff]  ;;  %s4541_s24 = scalar_lea.vmem %s6108_s28, 16  ;;  %s4545_s18 = sshll.u32 %s4627_s14, 4  ;;  %s4546_s18 = int_to_ptr.vmem [resolvable:$false] %s4545_s18 }
  0x60   : > { %562 = vperm.xlu1 %4387, %v531_v12   ;;  %557 = vperm.xlu0 %4386, %v530_v13   ;;  %v2865_v38 = vld [vmem:[%s6155_s7 + $0x38] sm:$0xff]  ;;  %v2864_v39 = vld [vmem:[%s6155_s7 + $0x30] sm:$0xff]  ;;  %v3293_v42 = vld [vmem:[%s6160_s12 + $0x8] sm:$0xff]  ;;  %p4542_p10 = scmp.ne.s32.totalorder %s6108_s28, %s4541_s24  ;;  %s4547_s15 = scalar_lea.vmem %s4546_s18, 32 }
  0x61   : > { %v3211_v40 = vld [vmem:[%s6158_s10 + $0x38] sm:$0xff]  ;;  %v3210_v41 = vld [vmem:[%s6158_s10 + $0x30] sm:$0xff]  ;;  %v3292_v43 = vld [vmem:[%s6160_s12] sm:$0xff]  ;;  %p6209_p1 = scmp.ne.s32.totalorder %s6207_s16, 0  ;;  %p4548_p4 = scmp.lt.s32.totalorder %s6108_s28, %s4546_s18 }
  0x62   : > { %v3295_v44 = vld [vmem:[%s6160_s12 + $0x18] sm:$0xff]  ;;  %v3294_v45 = vld [vmem:[%s6160_s12 + $0x10] sm:$0xff]  ;;  %v3297_v46 = vld [vmem:[%s6160_s12 + $0x28] sm:$0xff]  ;;  %p4549_p7 = scmp.lt.s32.totalorder %s4547_s15, %s4541_s24 }
  0x63   : > { %v3296_v47 = vld [vmem:[%s6160_s12 + $0x20] sm:$0xff]  ;;  %v3299_v48 = vld [vmem:[%s6160_s12 + $0x38] sm:$0xff]  ;;  %v3298_v49 = vld [vmem:[%s6160_s12 + $0x30] sm:$0xff]  ;;  %p4543_p2 = pnand %p4542_p10, %p6209_p1 }
  0x64   : > { %572 = vperm.xlu1 %4387, %v533_v16   ;;  %567 = vperm.xlu0 %4386, %v532_v17   ;;  %v3494_v50 = vld [vmem:[#allocation2] sm:$0x1]  ;;  %p4550_p8 = por %p4549_p7, %p4548_p4 }
  0x65   : > { %v4959_v51 = vld [vmem:[%s4956_s30] ss:$0 sm:$0xff]  ;;  %p4544_p3 = pneg %p4543_p2 }
  0x67   : > { %p4551_p11 = pnand %p4550_p8, %p4544_p3 }
  0x68   : > { %2535 = vperm.xlu1 %4387, %v2521_v18   ;;  %2530 = vperm.xlu0 %4386, %v2520_v19  }
  0x6c   : > { %2873 = vperm.xlu1 %4387, %v2859_v20   ;;  %2868 = vperm.xlu0 %4386, %v2858_v21   ;;  %v4618_v20 = vmov 683565275  }
  0x70   : > { %3219 = vperm.xlu1 %4387, %v3205_v22   ;;  %3214 = vperm.xlu0 %4386, %v3204_v23   ;;  %v4619_v22 = vmov 2475754826  }
  0x74   : > { %2545 = vperm.xlu1 %4387, %v2523_v24   ;;  %2540 = vperm.xlu0 %4386, %v2522_v25   ;;  %v4620_v24 = vmov 2131351028  }
  0x78   : > { %2883 = vperm.xlu1 %4387, %v2861_v26   ;;  %2878 = vperm.xlu0 %4386, %v2860_v27   ;;  %v4621_v26 = vmov 2102212464  }
  0x7c   : > { %3229 = vperm.xlu1 %4387, %v3207_v28   ;;  %3224 = vperm.xlu0 %4386, %v3206_v29   ;;  %v4622_v28 = vmov 920167782  }
  0x80   : > { %2555 = vperm.xlu1 %4387, %v2525_v30   ;;  %2550 = vperm.xlu0 %4386, %v2524_v31  }
  0x84   : > { %2893 = vperm.xlu1 %4387, %v2863_v32   ;;  %2888 = vperm.xlu0 %4386, %v2862_v33  }
  0x88   : > { %3239 = vperm.xlu1 %4387, %v3209_v34   ;;  %3234 = vperm.xlu0 %4386, %v3208_v35  }
  0x8c   : > { %2565 = vperm.xlu1 %4387, %v2527_v36   ;;  %2560 = vperm.xlu0 %4386, %v2526_v37   ;;  %v4623_v37 = vmov 1326507024  }
  0x90   : > { %2903 = vperm.xlu1 %4387, %v2865_v38   ;;  %2898 = vperm.xlu0 %4386, %v2864_v39  }
  0x94   : > { %3249 = vperm.xlu1 %4387, %v3211_v40   ;;  %3244 = vperm.xlu0 %4386, %v3210_v41  }
  0x98   : > { %3307 = vperm.xlu1 %4387, %v3293_v42   ;;  %3302 = vperm.xlu0 %4386, %v3292_v43  }
  0x9c   : > { %3317 = vperm.xlu1 %4387, %v3295_v44   ;;  %3312 = vperm.xlu0 %4386, %v3294_v45  }
  0xa0   : > { %3327 = vperm.xlu1 %4387, %v3297_v46   ;;  %3322 = vperm.xlu0 %4386, %v3296_v47  }
  0xa4   : > { %3337 = vperm.xlu1 %4387, %v3299_v48   ;;  %3332 = vperm.xlu0 %4386, %v3298_v49  }
  0xa8   : > { %3497 = vperm.xlu0 %4386, %v3494_v50  }
  0xd7   : > { %v548_v52 = vpop.permute.xlu1 %547  ;;  %v538_v53 = vpop.permute.xlu0 %537 }
  0xd8   : > { %v4962_v54 = vmul.f32 %v4959_v51, %v548_v52  ;;  %v4965_v55 = vmul.f32 %v4959_v51, %v538_v53 }
  0xda   : > { %v795_v56 = vand.u32 2147483647, %v4962_v54  ;;  %v798_v57 = vand.u32 2139095040, %v4962_v54  ;;  %v589_v58 = vand.u32 2147483647, %v4965_v55  ;;  %v592_v59 = vand.u32 2139095040, %v4965_v55 }
  0xdb   : > { %v553_v60 = vpop.permute.xlu1 %552 }
  0xdc   : > { %v799_v61 = vshrl.u32 %v798_v57, 23  ;;  %v4972_v62 = vmul.f32 %v4959_v51, %v553_v60  ;;  %v802_v63 = vand.u32 8388607, %v795_v56  ;;  %v593_v0 = vshrl.u32 %v592_v59, 23 }
  0xdd   : > { %v596_v1 = vand.u32 8388607, %v589_v58 }
  0xde   : > { %v3682_v2 = vadd.s32 4294967169, %v799_v61  ;;  %v3674_v3 = vadd.s32 4294967169, %v593_v0  ;;  %v901_v4 = vand.u32 2139095040, %v4972_v62  ;;  %v803_v6 = vor.u32 8388608, %v802_v63 }
  0xdf   : > { %v597_v7 = vor.u32 8388608, %v596_v1  ;;  %v898_v14 = vand.u32 2147483647, %v4972_v62 }
  0xe0   : > { %v805_v5 = vadd.s32 1, %v3682_v2  ;;  %v599_v8 = vadd.s32 1, %v3674_v3  ;;  %v902_v9 = vshrl.u32 %v901_v4, 23  ;;  %v4980_v16 = vshll.u32 %v803_v6, 8 }
  0xe1   : > { %v4982_v18 = vshll.u32 %v597_v7, 8 }
  0xe2   : > { %vm806_vm0 = vcmp.gt.s32.totalorder %v805_v5, 0  ;;  %vm600_vm1 = vcmp.gt.s32.totalorder %v599_v8, 0  ;;  %v3686_v11 = vadd.s32 4294967169, %v902_v9 }
  0xe3   : > { %v807_v10 = vsel %vm806_vm0, %v805_v5, 0  ;;  %v601_v13 = vsel %vm600_vm1, %v599_v8, 0  ;;  %vm797_vm1 = vcmp.lt.s32.totalorder %v4962_v54, 0 }
  0xe4   : > { %v809_v12 = vand.u32 31, %v807_v10  ;;  %v808_v15 = vshrl.u32 %v807_v10, 5  ;;  %v603_v17 = vand.u32 31, %v601_v13  ;;  %v4989_v30 = vshrl.u32 %v601_v13, 5 }
  0xe5   : > { %v4991_v31 = vadd.s32 1, %v3686_v11 }
  0xe6   : > { %v810_v19 = vsub.s32 32, %v809_v12  ;;  %v812_v21 = vshll.u32 %v4618_v20, %v809_v12  ;;  %v815_v23 = vshll.u32 %v4619_v22, %v809_v12  ;;  %v818_v25 = vshll.u32 %v4620_v24, %v809_v12 }
  0xe7   : > { %v821_v27 = vshll.u32 %v4621_v26, %v809_v12  ;;  %v824_v29 = vshll.u32 %v4622_v28, %v809_v12  ;;  %vm827_vm2 = vcmp.lt.s32.totalorder %v808_v15, 1  ;;  %vm828_vm3 = vcmp.lt.s32.totalorder %v808_v15, 2 }
  0xe8   : > { %v811_v32 = vshrl.u32 %v4618_v20, %v810_v19  ;;  %v813_v33 = vshrl.u32 %v4619_v22, %v810_v19  ;;  %v816_v34 = vshrl.u32 %v4620_v24, %v810_v19  ;;  %v819_v35 = vshrl.u32 %v4621_v26, %v810_v19 }
  0xe9   : > { %v822_v36 = vshrl.u32 %v4622_v28, %v810_v19  ;;  %v825_v38 = vshrl.u32 %v4623_v37, %v810_v19  ;;  %v604_v42 = vsub.s32 32, %v603_v17  ;;  %vm829_vm4 = vcmp.lt.s32.totalorder %v808_v15, 3 }
  0xea   : > { %v814_v39 = vor.u32 %v813_v33, %v812_v21  ;;  %v817_v40 = vor.u32 %v816_v34, %v815_v23  ;;  %v820_v41 = vor.u32 %v819_v35, %v818_v25  ;;  %vm830_vm5 = vcmp.lt.s32.totalorder %v808_v15, 4 }
  0xeb   : > { %v823_v43 = vor.u32 %v822_v36, %v821_v27  ;;  %v826_v44 = vor.u32 %v825_v38, %v824_v29  ;;  %v606_v53 = vshll.u32 %v4618_v20, %v603_v17  ;;  %v607_v60 = vshrl.u32 %v4619_v22, %v604_v42 }
  0xec   : > { %v831_v45 = vsel %vm827_vm2, %v811_v32, %v814_v39  ;;  %v832_v46 = vsel %vm830_vm5, %v820_v41, 2102212464  ;;  %v835_v47 = vsel %vm827_vm2, %v814_v39, %v817_v40  ;;  %v839_v48 = vsel %vm827_vm2, %v817_v40, %v820_v41 }
  0xed   : > { %v833_v49 = vsel %vm829_vm4, %v817_v40, %v832_v46  ;;  %v836_v50 = vsel %vm830_vm5, %v823_v43, 920167782  ;;  %v840_v52 = vsel %vm830_vm5, %v826_v44, 1326507024  ;;  %v609_v61 = vshll.u32 %v4619_v22, %v603_v17  ;;  %v543_v40 = vpop.permute.xlu0 %542 }
  0xee   : > { %v837_v57 = vsel %vm829_vm4, %v820_v41, %v836_v50  ;;  %v841_v59 = vsel %vm829_vm4, %v823_v43, %v840_v52  ;;  %v834_v63 = vsel %vm828_vm3, %v831_v45, %v833_v49  ;;  %v610_v2 = vshrl.u32 %v4620_v24, %v604_v42 }
  0xef   : > { %v838_v0 = vsel %vm828_vm3, %v835_v47, %v837_v57  ;;  %v842_v1 = vsel %vm828_vm3, %v839_v48, %v841_v59  ;;  %v608_v7 = vor.u32 %v607_v60, %v606_v53  ;;  %v612_v9 = vshll.u32 %v4620_v24, %v603_v17 }
  0xf0   : > { %v5007_v3 = vmul.u32.u64.low %v4980_v16, %v842_v1  ;;  %v5008_v4 = vmul.u32.u64.high %v4980_v16, %v842_v1, %v5007_v3  ;;  %v5011_v5 = vmul.u32.u64.low %v4980_v16, %v838_v0  ;;  %v5012_v6 = vmul.u32.u64.high %v4980_v16, %v838_v0, %v5011_v5 }
  0xf1   : > { %v611_v8 = vor.u32 %v610_v2, %v609_v61  ;;  %v613_v10 = vshrl.u32 %v4621_v26, %v604_v42  ;;  %v605_v11 = vshrl.u32 %v4618_v20, %v604_v42  ;;  %v615_v12 = vshll.u32 %v4621_v26, %v603_v17 }
  0xf2   : > { %v616_v13 = vshrl.u32 %v4622_v28, %v604_v42  ;;  %v619_v15 = vshrl.u32 %v4623_v37, %v604_v42  ;;  %v850_v19 = vmul.u32 %v4980_v16, %v834_v63  ;;  %v618_v23 = vshll.u32 %v4622_v28, %v603_v17 }
  0xf3   : > { %v614_v21 = vor.u32 %v613_v10, %v612_v9  ;;  %vm621_vm6 = vcmp.lt.s32.totalorder %v4989_v30, 1  ;;  %vm852_vm7 = vc.u32 %v5008_v4, %v5011_v5  ;;  %v853_v25 = vadd.s32 1, %v5012_v6 }
  0xf4   : > { %v617_v27 = vor.u32 %v616_v13, %v615_v12  ;;  %vm622_vm8 = vcmp.lt.s32.totalorder %v4989_v30, 2  ;;  %v620_v29 = vor.u32 %v619_v15, %v618_v23  ;;  %vm623_vm9 = vcmp.lt.s32.totalorder %v4989_v30, 3 }
  0xf5   : > { %vm624_vm10 = vcmp.lt.s32.totalorder %v4989_v30, 4  ;;  %v629_v32 = vsel %vm621_vm6, %v608_v7, %v611_v8  ;;  %v854_v16 = vsel %vm852_vm7, %v853_v25, %v5012_v6  ;;  %v633_v34 = vsel %vm621_vm6, %v611_v8, %v614_v21 }
  0xf6   : > { %v626_v33 = vsel %vm624_vm10, %v614_v21, 2102212464  ;;  %v630_v17 = vsel %vm624_vm10, %v617_v27, 920167782  ;;  %v855_v35 = vadd.s32 %v854_v16, %v850_v19  ;;  %v625_v36 = vsel %vm621_vm6, %v605_v11, %v608_v7 }
  0xf7   : > { %v631_v38 = vsel %vm623_vm9, %v614_v21, %v630_v17  ;;  %v634_v39 = vsel %vm624_vm10, %v620_v29, 1326507024  ;;  %v627_v41 = vsel %vm623_vm9, %v611_v8, %v626_v33  ;;  %vm909_vm11 = vcmp.gt.s32.totalorder %v4991_v31, 0 }
  0xf8   : > { %v632_v42 = vsel %vm622_vm8, %v629_v32, %v631_v38  ;;  %v635_v43 = vsel %vm623_vm9, %v617_v27, %v634_v39  ;;  %v856_v44 = vadd.s32 536870912, %v855_v35  ;;  %v5045_v50 = vmul.f32 %v4959_v51, %v543_v40 }
  0xf9   : > { %v636_v45 = vsel %vm622_vm8, %v633_v34, %v635_v43  ;;  %v5037_v46 = vmul.u32.u64.low %v4982_v18, %v632_v42  ;;  %v5038_v47 = vmul.u32.u64.high %v4982_v18, %v632_v42, %v5037_v46  ;;  %v628_v53 = vsel %vm622_vm8, %v625_v36, %v627_v41 }
  0xfa   : > { %v5041_v48 = vmul.u32.u64.low %v4982_v18, %v636_v45  ;;  %v5042_v49 = vmul.u32.u64.high %v4982_v18, %v636_v45, %v5041_v48  ;;  %v5047_v52 = vshrl.u32 %v856_v44, 30  ;;  %v910_v57 = vsel %vm909_vm11, %v4991_v31, 0 }
  0xfb   : > { %v647_v60 = vadd.s32 1, %v5038_v47  ;;  %v905_v61 = vand.u32 8388607, %v898_v14  ;;  %v644_v63 = vmul.u32 %v4982_v18, %v628_v53  ;;  %v695_v0 = vand.u32 2139095040, %v5045_v50 }
  0xfc   : > { %v858_v59 = vshll.u32 %v5047_v52, 30  ;;  %vm646_vm12 = vc.u32 %v5042_v49, %v5037_v46  ;;  %v912_v30 = vand.u32 31, %v910_v57  ;;  %v851_v18 = vadd.s32 %v5011_v5, %v5008_v4 }
  0xfd   : > { %v648_v2 = vsel %vm646_vm12, %v647_v60, %v5038_v47  ;;  %v906_v31 = vor.u32 8388608, %v905_v61  ;;  %v696_v8 = vshrl.u32 %v695_v0, 23  ;;  %v5067_v19 = vshrl.u32 %v910_v57, 5 }
  0xfe   : > { %v859_v1 = vsub.s32 %v855_v35, %v858_v59  ;;  %v649_v3 = vadd.s32 %v648_v2, %v644_v63  ;;  %v913_v10 = vsub.s32 32, %v912_v30  ;;  %v881_v25 = vsub.s32 4, %v5047_v52 }
  0xff   : > { %v5062_v13 = vshll.u32 %v906_v31, 8  ;;  %v3678_v21 = vadd.s32 4294967169, %v696_v8  ;;  %v645_v27 = vadd.s32 %v5037_v46, %v5042_v49  ;;  %v915_v5 = vshll.u32 %v4618_v20, %v912_v30 }
 0x100   : > { %v861_v6 = vsub.s32 0, %v859_v1  ;;  %v650_v7 = vadd.s32 536870912, %v649_v3  ;;  %v925_v29 = vshrl.u32 %v4622_v28, %v913_v10  ;;  %v916_v16 = vshrl.u32 %v4619_v22, %v913_v10 }
 0x101   : > { %v919_v33 = vshrl.u32 %v4620_v24, %v913_v10  ;;  %v922_v4 = vshrl.u32 %v4621_v26, %v913_v10  ;;  %v924_v17 = vshll.u32 %v4621_v26, %v912_v30  ;;  %v928_v34 = vshrl.u32 %v4623_v37, %v913_v10 }
 0x102   : > { %v3683_v9 = vmin.u32 %v861_v6, %v859_v1  ;;  %v5060_v11 = vshrl.u32 %v650_v7, 30  ;;  %v918_v38 = vshll.u32 %v4619_v22, %v912_v30  ;;  %v921_v39 = vshll.u32 %v4620_v24, %v912_v30 }
 0x103   : > { %v926_v42 = vor.u32 %v925_v29, %v924_v17  ;;  %v927_v43 = vshll.u32 %v4622_v28, %v912_v30  ;;  %v917_v45 = vor.u32 %v916_v16, %v915_v5  ;;  %v914_v60 = vshrl.u32 %v4618_v20, %v913_v10 }
 0x104   : > { %v863_v12 = vclz %v3683_v9  ;;  %v652_v15 = vshll.u32 %v5060_v11, 30  ;;  %v920_v46 = vor.u32 %v919_v33, %v918_v38  ;;  %v923_v47 = vor.u32 %v922_v4, %v921_v39 }
 0x105   : > { %v929_v57 = vor.u32 %v928_v34, %v927_v43  ;;  %vm930_vm14 = vcmp.lt.s32.totalorder %v5067_v19, 1  ;;  %vm933_vm15 = vcmp.lt.s32.totalorder %v5067_v19, 4  ;;  %vm931_vm0 = vcmp.lt.s32.totalorder %v5067_v19, 2 }
 0x106   : > { %v3684_v23 = vadd.s32 4294967294, %v863_v12  ;;  %v5072_v32 = vsub.s32 %v649_v3, %v652_v15  ;;  %v939_v0 = vsel %vm933_vm15, %v926_v42, 920167782  ;;  %vm932_vm2 = vcmp.lt.s32.totalorder %v5067_v19, 3 }
 0x107   : > { %v942_v30 = vsel %vm930_vm14, %v920_v46, %v923_v47  ;;  %v935_v6 = vsel %vm933_vm15, %v923_v47, 2102212464  ;;  %v940_v31 = vsel %vm932_vm2, %v923_v47, %v939_v0  ;;  %v943_v7 = vsel %vm933_vm15, %v929_v57, 1326507024 }
 0x108   : > { %vm3685_vm13 = vcmp.lt.s32.totalorder %v3684_v23, 0  ;;  %v655_v36 = vsub.s32 0, %v5072_v32  ;;  %v934_v9 = vsel %vm930_vm14, %v914_v60, %v917_v45  ;;  %v944_v10 = vsel %vm932_vm2, %v926_v42, %v943_v7 }
 0x109   : > { %v866_v35 = vsel %vm3685_vm13, 0, %v3684_v23  ;;  %v945_v23 = vsel %vm931_vm0, %v942_v30, %v944_v10  ;;  %v936_v33 = vsel %vm932_vm2, %v920_v46, %v935_v6  ;;  %v702_v4 = vadd.s32 1, %v3678_v21 }
 0x10a   : > { %v867_v40 = vsub.s32 32, %v866_v35  ;;  %v871_v41 = vsub.s32 4294967266, %v866_v35  ;;  %v3675_v44 = vmin.u32 %v655_v36, %v5072_v32  ;;  %v868_v48 = vshll.u32 %v859_v1, %v866_v35 }
 0x10b   : > { %v938_v1 = vsel %vm930_vm14, %v917_v45, %v920_v46  ;;  %v5109_v34 = vmul.u32.u64.low %v5062_v13, %v945_v23  ;;  %v5110_v35 = vmul.u32.u64.high %v5062_v13, %v945_v23, %v5109_v34  ;;  %vm591_vm4 = vcmp.lt.s32.totalorder %v4965_v55, 0 }
 0x10c   : > { %v869_v49 = vshrl.u32 %v851_v18, %v867_v40  ;;  %v872_v53 = vadd.s32 127, %v871_v41  ;;  %v657_v59 = vclz %v3675_v44  ;;  %v941_v15 = vsel %vm931_vm0, %v938_v1, %v940_v31 }
 0x10d   : > { %v5113_v39 = vmul.u32.u64.low %v5062_v13, %v941_v15  ;;  %v5114_v40 = vmul.u32.u64.high %v5062_v13, %v941_v15, %v5113_v39  ;;  %v692_v42 = vand.u32 2147483647, %v5045_v50  ;;  %vm703_vm5 = vcmp.gt.s32.totalorder %v702_v4, 0 }
 0x10e   : > { %v870_v61 = vor.u32 %v869_v49, %v868_v48  ;;  %v873_v63 = vshll.u32 %v872_v53, 23  ;;  %v3676_v2 = vadd.s32 4294967294, %v657_v59  ;;  %v704_v44 = vsel %vm703_vm5, %v702_v4, 0 }
 0x10f   : > { %vm5123_vm6 = vcmp.le.f32.partialorder %v795_v56, 0.7853982  ;;  %v675_v46 = vsub.s32 4, %v5060_v11  ;;  %vm955_vm7 = vc.u32 %v5110_v35, %v5113_v39  ;;  %v882_v19 = vsel %vm797_vm1, %v881_v25, %v5047_v52 }
 0x110   : > { %v874_v3 = vor.u32 4788187, %v873_v63  ;;  %v877_v8 = vcvt.s32.f32 %v870_v61  ;;  %vm3677_vm3 = vcmp.lt.s32.totalorder %v3676_v2, 0  ;;  %vm5142_vm8 = vcmp.le.f32.partialorder %v589_v58, 0.7853982 }
 0x111   : > { %v660_v18 = vsel %vm3677_vm3, 0, %v3676_v2  ;;  %v956_v49 = vadd.s32 1, %v5114_v40  ;;  %v5150_v57 = vand.u32 8388607, %v692_v42  ;;  %v706_v52 = vand.u32 31, %v704_v44 }
 0x112   : > { %v875_v12 = vand.u32 2147483647, %v874_v3  ;;  %v661_v29 = vsub.s32 32, %v660_v18  ;;  %v665_v16 = vsub.s32 4294967266, %v660_v18  ;;  %v662_v17 = vshll.u32 %v5072_v32, %v660_v18  ;;  %v563_v3 = vpop.permute.xlu1 %562 }
 0x113   : > { %v937_v32 = vsel %vm931_vm0, %v934_v9, %v936_v33  ;;  %v957_v60 = vsel %vm955_vm7, %v956_v49, %v5114_v40  ;;  %v5155_v58 = vsel %vm5123_vm6, 0, %v882_v19  ;;  %v676_v61 = vsel %vm591_vm4, %v675_v46, %v5060_v11 }
 0x114   : > { %v878_v5 = vmul.f32 %v877_v8, %v875_v12  ;;  %v663_v36 = vshrl.u32 %v645_v27, %v661_v29  ;;  %v666_v38 = vadd.s32 127, %v665_v16  ;;  %v953_v53 = vmul.u32 %v5062_v13, %v937_v32 }
 0x115   : > { %v707_v13 = vsub.s32 32, %v706_v52  ;;  %v5160_v2 = vshrl.u32 %v704_v44, 5  ;;  %v709_v1 = vshll.u32 %v4618_v20, %v706_v52  ;;  %v712_v30 = vshll.u32 %v4619_v22, %v706_v52 }
 0x116   : > { %v879_v41 = vxor.u32 2147483648, %v878_v5  ;;  %v664_v21 = vor.u32 %v663_v36, %v662_v17  ;;  %v667_v43 = vshll.u32 %v666_v38, 23  ;;  %v958_v63 = vadd.s32 %v957_v60, %v953_v53 }
 0x117   : > { %v710_v31 = vshrl.u32 %v4619_v22, %v707_v13  ;;  %v713_v7 = vshrl.u32 %v4620_v24, %v707_v13  ;;  %v715_v8 = vshll.u32 %v4620_v24, %v706_v52  ;;  %v716_v11 = vshrl.u32 %v4621_v26, %v707_v13 }
 0x118   : > { %v880_v45 = vsel %vm797_vm1, %v879_v41, %v878_v5  ;;  %v668_v48 = vor.u32 4788187, %v667_v43  ;;  %v671_v59 = vcvt.s32.f32 %v664_v21  ;;  %v959_v6 = vadd.s32 536870912, %v958_v63 }
 0x119   : > { %v883_v56 = vsel %vm5123_vm6, %v4962_v54, %v880_v45  ;;  %v718_v10 = vshll.u32 %v4621_v26, %v706_v52  ;;  %v719_v12 = vshrl.u32 %v4622_v28, %v707_v13  ;;  %v888_v18 = vand.u32 3, %v5155_v58 }
 0x11a   : > { %4388 = vcosq.f32 %v883_v56  ;;  %v669_v25 = vand.u32 2147483647, %v668_v48  ;;  %v5171_v15 = vshrl.u32 %v959_v6, 30  ;;  %v711_v23 = vor.u32 %v710_v31, %v709_v1 }
 0x11b   : > { %4390 = vsinq.f32 %v883_v56  ;;  %v5174_v29 = vmul.f32 %v4959_v51, %v563_v3  ;;  %v714_v33 = vor.u32 %v713_v7, %v712_v30  ;;  %v717_v4 = vor.u32 %v716_v11, %v715_v8 }
 0x11c   : > { %v672_v0 = vmul.f32 %v671_v59, %v669_v25  ;;  %v720_v5 = vor.u32 %v719_v12, %v718_v10  ;;  %v5183_v34 = vsel %vm5142_vm8, 0, %v676_v61  ;;  %v961_v36 = vshll.u32 %v5171_v15, 30 }
 0x11d   : > { %vm727_vm9 = vcmp.lt.s32.totalorder %v5160_v2, 4  ;;  %v700_v38 = vor.u32 8388608, %v5150_v57  ;;  %v722_v40 = vshrl.u32 %v4623_v37, %v707_v13  ;;  %vm724_vm10 = vcmp.lt.s32.totalorder %v5160_v2, 1 }
 0x11e   : > { %v673_v9 = vxor.u32 2147483648, %v672_v0  ;;  %v733_v41 = vsel %vm727_vm9, %v720_v5, 920167782  ;;  %v5193_v43 = vsub.s32 %v958_v63, %v961_v36  ;;  %vm726_vm11 = vcmp.lt.s32.totalorder %v5160_v2, 3 }
 0x11f   : > { %v721_v27 = vshll.u32 %v4622_v28, %v706_v52  ;;  %v732_v45 = vsel %vm724_vm10, %v711_v23, %v714_v33  ;;  %v734_v46 = vsel %vm726_vm11, %v717_v4, %v733_v41  ;;  %vm889_vm12 = vcmp.lt.s32.totalorder %v888_v18, 2 }
 0x120   : > { %v674_v16 = vsel %vm591_vm4, %v673_v9, %v672_v0  ;;  %vm893_vm13 = vcmp.eq.s32.totalorder %v888_v18, 2  ;;  %v964_v56 = vsub.s32 0, %v5193_v43  ;;  %vm890_vm14 = vcmp.eq.s32.totalorder %v888_v18, 0 }
 0x121   : > { %v677_v17 = vsel %vm5142_vm8, %v4965_v55, %v674_v16  ;;  %v723_v48 = vor.u32 %v722_v40, %v721_v27  ;;  %vm725_vm15 = vcmp.lt.s32.totalorder %v5160_v2, 2  ;;  %v682_v53 = vand.u32 3, %v5183_v34 }
 0x122   : > { %4392 = vcosq.f32 %v677_v17  ;;  %v3687_v57 = vmin.u32 %v964_v56, %v5193_v43  ;;  %v735_v52 = vsel %vm725_vm15, %v732_v45, %v734_v46  ;;  %vm887_vm0 = vweird.f32 %v4962_v54 }
 0x123   : > { %4394 = vsinq.f32 %v677_v17  ;;  %v740_v59 = vshll.u32 %v700_v38, 8  ;;  %v1107_v60 = vand.u32 2139095040, %v5174_v29  ;;  %v708_v0 = vshrl.u32 %v4618_v20, %v707_v13 }
 0x124   : > { %v5191_v21 = vpop.eup %4388  ;;  %v966_v63 = vclz %v3687_v57  ;;  %v729_v1 = vsel %vm727_vm9, %v717_v4, 2102212464  ;;  %v736_v30 = vsel %vm724_vm10, %v714_v33, %v717_v4  ;;  %v737_v3 = vsel %vm727_vm9, %v723_v48, 1326507024 }
 0x125   : > { %v5197_v32 = vpop.eup %4390  ;;  %v894_v44 = vxor.u32 2147483648, %v5191_v21  ;;  %v5231_v6 = vmul.u32.u64.low %v740_v59, %v735_v52  ;;  %v5232_v31 = vmul.u32.u64.high %v740_v59, %v735_v52, %v5231_v6  ;;  %vm681_vm1 = vweird.f32 %v4965_v55 }
 0x126   : > { %v891_v19 = vxor.u32 2147483648, %v5197_v32  ;;  %vm683_vm2 = vcmp.lt.s32.totalorder %v682_v53, 2  ;;  %vm684_vm3 = vcmp.eq.s32.totalorder %v682_v53, 0  ;;  %v3688_v7 = vadd.s32 4294967294, %v966_v63 }
 0x127   : > { %v895_v47 = vsel %vm893_vm13, %v894_v44, %v5197_v32  ;;  %vm687_vm4 = vcmp.eq.s32.totalorder %v682_v53, 2  ;;  %v728_v13 = vsel %vm724_vm10, %v708_v0, %v711_v23  ;;  %v730_v9 = vsel %vm726_vm11, %v714_v33, %v729_v1 }
 0x128   : > { %v892_v49 = vsel %vm890_vm14, %v5191_v21, %v891_v19  ;;  %v738_v11 = vsel %vm726_vm11, %v720_v5, %v737_v3  ;;  %vm3689_vm5 = vcmp.lt.s32.totalorder %v3688_v7, 0  ;;  %v1108_v16 = vshrl.u32 %v1107_v60, 23 }
 0x129   : > { %v896_v25 = vsel %vm889_vm12, %v892_v49, %v895_v47  ;;  %v739_v18 = vsel %vm725_vm15, %v736_v30, %v738_v11  ;;  %v969_v17 = vsel %vm3689_vm5, 0, %v3688_v7  ;;  %v954_v5 = vadd.s32 %v5113_v39, %v5110_v35 }
 0x12a   : > { %v5222_v61 = vsel %vm887_vm0, nan, %v896_v25  ;;  %v5250_v36 = vmul.u32.u64.low %v740_v59, %v739_v18  ;;  %v5251_v23 = vmul.u32.u64.high %v740_v59, %v739_v18, %v5250_v36  ;;  %v970_v38 = vsub.s32 32, %v969_v17 }
 0x12b   : > { %v984_v40 = vsub.s32 4, %v5171_v15  ;;  %v974_v27 = vsub.s32 4294967266, %v969_v17  ;;  %v731_v45 = vsel %vm725_vm15, %v728_v13, %v730_v9  ;;  %v750_v46 = vadd.s32 1, %v5232_v31 }
 0x12c   : > { %v5236_v8 = vpop.eup %4392  ;;  %v1714_v56 = vadd.s32 3, %v5155_v58  ;;  %v972_v48 = vshrl.u32 %v954_v5, %v970_v38  ;;  %v3694_v35 = vadd.s32 4294967169, %v1108_v16  ;;  %vm900_vm6 = vcmp.lt.s32.totalorder %v4972_v62, 0 }
 0x12d   : > { %v5244_v10 = vpop.eup %4394  ;;  %v688_v12 = vxor.u32 2147483648, %v5236_v8  ;;  %v971_v49 = vshll.u32 %v5193_v43, %v969_v17  ;;  %v975_v57 = vadd.s32 127, %v974_v27  ;;  %v747_v52 = vmul.u32 %v740_v59, %v731_v45  ;;  %v558_v43 = vpop.permute.xlu0 %557 }
 0x12e   : > { %v685_v4 = vxor.u32 2147483648, %v5244_v10  ;;  %vm749_vm7 = vc.u32 %v5251_v23, %v5231_v6  ;;  %v1104_v2 = vand.u32 2147483647, %v5174_v29  ;;  %v1114_v58 = vadd.s32 1, %v3694_v35 }
 0x12f   : > { %v689_v33 = vsel %vm687_vm4, %v688_v12, %v5244_v10  ;;  %v973_v53 = vor.u32 %v972_v48, %v971_v49  ;;  %v976_v25 = vshll.u32 %v975_v57, 23  ;;  %v985_v60 = vsel %vm900_vm6, %v984_v40, %v5171_v15 }
 0x130   : > { %v686_v41 = vsel %vm684_vm3, %v5236_v8, %v685_v4  ;;  %v751_v63 = vsel %vm749_vm7, %v750_v46, %v5232_v31  ;;  %v5281_v0 = vand.u32 3, %v1714_v56  ;;  %vm1115_vm8 = vcmp.gt.s32.totalorder %v1114_v58, 0 }
 0x131   : > { %v690_v47 = vsel %vm683_vm2, %v686_v41, %v689_v33  ;;  %v752_v1 = vadd.s32 %v751_v63, %v747_v52  ;;  %v1506_v59 = vadd.s32 3, %v5183_v34  ;;  %vm5286_vm9 = vcmp.le.f32.partialorder %v898_v14, 0.7853982 }
 0x132   : > { %v5270_v39 = vsel %vm681_vm1, nan, %v690_v47  ;;  %v977_v3 = vor.u32 4788187, %v976_v25  ;;  %v1116_v7 = vsel %vm1115_vm8, %v1114_v58, 0  ;;  %v987_v15 = vsel %vm5286_vm9, 0, %v985_v60 }
 0x133   : > { %v753_v13 = vadd.s32 536870912, %v752_v1  ;;  %v1111_v31 = vand.u32 8388607, %v1104_v2  ;;  %v1118_v9 = vand.u32 31, %v1116_v7  ;;  %v980_v18 = vcvt.s32.f32 %v973_v53 }
 0x134   : > { %v978_v11 = vand.u32 2147483647, %v977_v3  ;;  %v5295_v34 = vmul.f32 %v4959_v51, %v558_v43  ;;  %vm1717_vm10 = vcmp.eq.s32.totalorder %v5281_v0, 0  ;;  %vm1720_vm11 = vcmp.eq.s32.totalorder %v5281_v0, 2 }
 0x135   : > { %v5298_v14 = vshrl.u32 %v753_v13, 30  ;;  %v1119_v16 = vsub.s32 32, %v1118_v9  ;;  %v5301_v17 = vand.u32 3, %v1506_v59  ;;  %v5303_v33 = vand.u32 3, %v987_v15 }
 0x136   : > { %v981_v36 = vmul.f32 %v980_v18, %v978_v11  ;;  %v5308_v5 = vsel %vm1720_vm11, %v894_v44, %v5197_v32  ;;  %v5310_v38 = vadd.s32 3, %v987_v15  ;;  %v1112_v41 = vor.u32 8388608, %v1111_v31 }
 0x137   : > { %v755_v40 = vshll.u32 %v5298_v14, 30  ;;  %v1122_v45 = vshrl.u32 %v4619_v22, %v1119_v16  ;;  %v1125_v46 = vshrl.u32 %v4620_v24, %v1119_v16  ;;  %v1004_v56 = vand.u32 2139095040, %v5295_v34 }
 0x138   : > { %v982_v27 = vxor.u32 2147483648, %v981_v36  ;;  %v5318_v48 = vshrl.u32 %v1116_v7, 5  ;;  %v1128_v35 = vshrl.u32 %v4621_v26, %v1119_v16  ;;  %v1131_v44 = vshrl.u32 %v4622_v28, %v1119_v16 }
 0x139   : > { %v5316_v47 = vsub.s32 %v752_v1, %v755_v40  ;;  %vm694_vm12 = vcmp.lt.s32.totalorder %v5045_v50, 0  ;;  %v1121_v57 = vshll.u32 %v4618_v20, %v1118_v9  ;;  %v1124_v52 = vshll.u32 %v4619_v22, %v1118_v9 }
 0x13a   : > { %v983_v49 = vsel %vm900_vm6, %v982_v27, %v981_v36  ;;  %v1134_v58 = vshrl.u32 %v4623_v37, %v1119_v16  ;;  %v1127_v60 = vshll.u32 %v4620_v24, %v1118_v9  ;;  %v1130_v63 = vshll.u32 %v4621_v26, %v1118_v9 }
 0x13b   : > { %v986_v53 = vsel %vm5286_vm9, %v4972_v62, %v983_v49  ;;  %v758_v25 = vsub.s32 0, %v5316_v47  ;;  %v1123_v1 = vor.u32 %v1122_v45, %v1121_v57  ;;  %v1126_v43 = vor.u32 %v1125_v46, %v1124_v52 }
 0x13c   : > { %4396 = vcosq.f32 %v986_v53  ;;  %v1133_v59 = vshll.u32 %v4622_v28, %v1118_v9  ;;  %v1129_v7 = vor.u32 %v1128_v35, %v1127_v60  ;;  %v1132_v15 = vor.u32 %v1131_v44, %v1130_v63 }
 0x13d   : > { %4398 = vsinq.f32 %v986_v53  ;;  %v3679_v3 = vmin.u32 %v758_v25, %v5316_v47  ;;  %v5341_v30 = vsel %vm1717_vm10, %v5191_v21, %v891_v19  ;;  %v748_v13 = vadd.s32 %v5231_v6, %v5251_v23 }
 0x13e   : > { %v1135_v31 = vor.u32 %v1134_v58, %v1133_v59  ;;  %v1005_v11 = vshrl.u32 %v1004_v56, 23  ;;  %vm5347_vm13 = vcmp.le.f32.partialorder %v692_v42, 0.7853982  ;;  %v778_v36 = vsub.s32 4, %v5298_v14 }
 0x13f   : > { %v760_v18 = vclz %v3679_v3  ;;  %vm1136_vm14 = vcmp.lt.s32.totalorder %v5318_v48, 1  ;;  %v5353_v32 = vshll.u32 %v1112_v41, 8  ;;  %vm996_vm15 = vcmp.eq.s32.totalorder %v5303_v33, 2 }
 0x140   : > { %v1120_v21 = vshrl.u32 %v4618_v20, %v1119_v16  ;;  %vm1137_vm2 = vcmp.lt.s32.totalorder %v5318_v48, 2  ;;  %vm1139_vm3 = vcmp.lt.s32.totalorder %v5318_v48, 4  ;;  %v1144_v42 = vsel %vm1136_vm14, %v1123_v1, %v1126_v43 }
 0x141   : > { %vm1509_vm4 = vcmp.eq.s32.totalorder %v5301_v17, 0  ;;  %vm1512_vm5 = vcmp.eq.s32.totalorder %v5301_v17, 2  ;;  %vm993_vm6 = vcmp.eq.s32.totalorder %v5303_v33, 0  ;;  %v3680_v19 = vadd.s32 4294967294, %v760_v18 }
 0x142   : > { %vm1138_vm7 = vcmp.lt.s32.totalorder %v5318_v48, 3  ;;  %v1145_v6 = vsel %vm1139_vm3, %v1132_v15, 920167782  ;;  %v1148_v23 = vsel %vm1136_vm14, %v1126_v43, %v1129_v7  ;;  %vm992_vm8 = vcmp.lt.s32.totalorder %v5303_v33, 2  ;;  %v573_v33 = vpop.permute.xlu1 %572 }
 0x143   : > { %v1141_v16 = vsel %vm1139_vm3, %v1129_v7, 2102212464  ;;  %v1146_v40 = vsel %vm1138_vm7, %v1129_v7, %v1145_v6  ;;  %v1149_v41 = vsel %vm1139_vm3, %v1135_v31, 1326507024  ;;  %v3690_v27 = vadd.s32 4294967169, %v1005_v11 }
 0x144   : > { %vm990_vm9 = vweird.f32 %v4972_v62  ;;  %vm3681_vm10 = vcmp.lt.s32.totalorder %v3680_v19, 0  ;;  %v779_v45 = vsel %vm694_vm12, %v778_v36, %v5298_v14  ;;  %v1147_v46 = vsel %vm1137_vm2, %v1144_v42, %v1146_v40 }
 0x145   : > { %v1150_v56 = vsel %vm1138_vm7, %v1132_v15, %v1149_v41  ;;  %v763_v35 = vsel %vm3681_vm10, 0, %v3680_v19  ;;  %v5381_v49 = vmul.u32.u64.low %v5353_v32, %v1147_v46  ;;  %v5382_v57 = vmul.u32.u64.high %v5353_v32, %v1147_v46, %v5381_v49 }
 0x146   : > { %v1151_v44 = vsel %vm1137_vm2, %v1148_v23, %v1150_v56  ;;  %vm1716_vm11 = vcmp.lt.s32.totalorder %v5281_v0, 2  ;;  %v764_v52 = vsub.s32 32, %v763_v35  ;;  %v768_v58 = vsub.s32 4294967266, %v763_v35  ;;  %v4397_v25 = vpop.eup %4396 }
 0x147   : > { %v1140_v14 = vsel %vm1136_vm14, %v1120_v21, %v1123_v1  ;;  %v1142_v53 = vsel %vm1138_vm7, %v1126_v43, %v1141_v16  ;;  %vm1508_vm3 = vcmp.lt.s32.totalorder %v5301_v17, 2  ;;  %v5392_v60 = vand.u32 3, %v5310_v38  ;;  %v4399_v7 = vpop.eup %4398 }
 0x148   : > { %v5395_v63 = vmul.u32.u64.low %v5353_v32, %v1151_v44  ;;  %v5396_v59 = vmul.u32.u64.high %v5353_v32, %v1151_v44, %v5395_v63  ;;  %v1011_v3 = vadd.s32 1, %v3690_v27  ;;  %v997_v15 = vxor.u32 2147483648, %v4397_v25 }
 0x149   : > { %v765_v31 = vshll.u32 %v5316_v47, %v763_v35  ;;  %v766_v11 = vshrl.u32 %v748_v13, %v764_v52  ;;  %v769_v1 = vadd.s32 127, %v768_v58  ;;  %v994_v18 = vxor.u32 2147483648, %v4399_v7 }
 0x14a   : > { %v781_v43 = vsel %vm5347_vm13, 0, %v779_v45  ;;  %v1143_v36 = vsel %vm1137_vm2, %v1140_v14, %v1142_v53  ;;  %v1162_v38 = vadd.s32 1, %v5382_v57  ;;  %v998_v21 = vsel %vm996_vm15, %v997_v15, %v4399_v7 }
 0x14b   : > { %v767_v42 = vor.u32 %v766_v11, %v765_v31  ;;  %v770_v19 = vshll.u32 %v769_v1, 23  ;;  %vm1012_vm14 = vcmp.gt.s32.totalorder %v1011_v3, 0  ;;  %v1511_v47 = vsel %vm1509_vm4, %v5236_v8, %v685_v4 }
 0x14c   : > { %v1514_v48 = vsel %vm1512_vm5, %v688_v12, %v5244_v10  ;;  %v995_v13 = vsel %vm993_vm6, %v4397_v25, %v994_v18  ;;  %vm1161_vm15 = vc.u32 %v5396_v59, %v5381_v49  ;;  %v1159_v16 = vmul.u32 %v5353_v32, %v1143_v36 }
 0x14d   : > { %v999_v6 = vsel %vm992_vm8, %v995_v13, %v998_v21  ;;  %v771_v23 = vor.u32 4788187, %v770_v19  ;;  %v1001_v4 = vand.u32 2147483647, %v5295_v34  ;;  %v1610_v40 = vadd.s32 3, %v781_v43 }
 0x14e   : > { %v1000_v8 = vsel %vm990_vm9, nan, %v999_v6  ;;  %v1163_v10 = vsel %vm1161_vm15, %v1162_v38, %v5382_v57  ;;  %v1013_v12 = vsel %vm1012_vm14, %v1011_v3, 0  ;;  %v774_v45 = vcvt.s32.f32 %v767_v42 }
 0x14f   : > { %v5428_v41 = vpack.c.bf16 %v1000_v8, %v5222_v61  ;;  %v772_v27 = vand.u32 2147483647, %v771_v23  ;;  %v1164_v46 = vadd.s32 %v1163_v10, %v1159_v16  ;;  %v5434_v32 = vsel %vm1716_vm11, %v5341_v30, %v5308_v5 }
 0x150   : > { %vm1821_vm2 = vcmp.eq.s32.totalorder %v5392_v60, 0  ;;  %vm1824_vm4 = vcmp.eq.s32.totalorder %v5392_v60, 2  ;;  %v1015_v56 = vand.u32 31, %v1013_v12  ;;  %v1515_v35 = vsel %vm1508_vm3, %v1511_v47, %v1514_v48 }
 0x151   : > { %vm1820_vm5 = vcmp.lt.s32.totalorder %v5392_v60, 2  ;;  %v775_v61 = vmul.f32 %v774_v45, %v772_v27  ;;  %v1165_v44 = vadd.s32 536870912, %v1164_v46  ;;  %v1008_v57 = vand.u32 8388607, %v1001_v4 }
 0x152   : > { %v5443_v52 = vand.u32 3, %v781_v43  ;;  %v5445_v0 = vand.u32 3, %v1610_v40  ;;  %v1016_v5 = vsub.s32 32, %v1015_v56  ;;  %v5448_v30 = vmul.f32 %v4959_v51, %v573_v33 }
 0x153   : > { %v1823_v58 = vsel %vm1821_vm2, %v4397_v25, %v994_v18  ;;  %v1826_v14 = vsel %vm1824_vm4, %v997_v15, %v4399_v7  ;;  %v776_v53 = vxor.u32 2147483648, %v775_v61  ;;  %v5450_v17 = vshrl.u32 %v1165_v44, 30 }
 0x154   : > { %v1018_v63 = vshll.u32 %v4618_v20, %v1015_v56  ;;  %v1019_v3 = vshrl.u32 %v4619_v22, %v1016_v5  ;;  %v1022_v31 = vshrl.u32 %v4620_v24, %v1016_v5  ;;  %v1025_v11 = vshrl.u32 %v4621_v26, %v1016_v5 }
 0x155   : > { %v777_v1 = vsel %vm694_vm12, %v776_v53, %v775_v61  ;;  %v1167_v43 = vshll.u32 %v5450_v17, 30  ;;  %v1021_v51 = vshll.u32 %v4619_v22, %v1015_v56  ;;  %v1028_v25 = vshrl.u32 %v4622_v28, %v1016_v5 }
 0x156   : > { %v780_v7 = vsel %vm5347_vm13, %v5045_v50, %v777_v1  ;;  %v1014_v15 = vshrl.u32 %v1013_v12, 5  ;;  %v1024_v18 = vshll.u32 %v4620_v24, %v1015_v56  ;;  %v1027_v36 = vshll.u32 %v4621_v26, %v1015_v56 }
 0x157   : > { %4400 = vcosq.f32 %v780_v7  ;;  %v5466_v38 = vsub.s32 %v1164_v46, %v1167_v43  ;;  %v1020_v21 = vor.u32 %v1019_v3, %v1018_v63  ;;  %v1023_v42 = vor.u32 %v1022_v31, %v1021_v51 }
 0x158   : > { %4402 = vsinq.f32 %v780_v7  ;;  %v1026_v19 = vor.u32 %v1025_v11, %v1024_v18  ;;  %v1029_v47 = vor.u32 %v1028_v25, %v1027_v36  ;;  %v1031_v48 = vshrl.u32 %v4623_v37, %v1016_v5 }
 0x159   : > { %v5471_v13 = vsel %vm681_vm1, nan, %v1515_v35  ;;  %v1170_v9 = vsub.s32 0, %v5466_v38  ;;  %v1009_v6 = vor.u32 8388608, %v1008_v57  ;;  %v1030_v23 = vshll.u32 %v4622_v28, %v1015_v56 }
 0x15a   : > { %v1827_v16 = vsel %vm1820_vm5, %v1823_v58, %v1826_v14  ;;  %v1017_v8 = vshrl.u32 %v4618_v20, %v1016_v5  ;;  %v1310_v40 = vand.u32 2147483647, %v5448_v30  ;;  %v1313_v10 = vand.u32 2139095040, %v5448_v30 }
 0x15b   : > { %vm790_vm12 = vcmp.eq.s32.totalorder %v5443_v52, 2  ;;  %vm1616_vm13 = vcmp.eq.s32.totalorder %v5445_v0, 2  ;;  %v3695_v55 = vmin.u32 %v1170_v9, %v5466_v38  ;;  %v1032_v12 = vor.u32 %v1031_v48, %v1030_v23 }
 0x15c   : > { %vm1033_vm1 = vcmp.lt.s32.totalorder %v1014_v15, 1  ;;  %vm1036_vm6 = vcmp.lt.s32.totalorder %v1014_v15, 4  ;;  %vm787_vm7 = vcmp.eq.s32.totalorder %v5443_v52, 0  ;;  %vm1613_vm8 = vcmp.eq.s32.totalorder %v5445_v0, 0 }
 0x15d   : > { %vm1035_vm10 = vcmp.lt.s32.totalorder %v1014_v15, 3  ;;  %v1038_v60 = vsel %vm1036_vm6, %v1026_v19, 2102212464  ;;  %v1041_v27 = vsel %vm1033_vm1, %v1020_v21, %v1023_v42  ;;  %v1042_v45 = vsel %vm1036_vm6, %v1029_v47, 920167782 }
 0x15e   : > { %vm786_vm11 = vcmp.lt.s32.totalorder %v5443_v52, 2  ;;  %vm1612_vm3 = vcmp.lt.s32.totalorder %v5445_v0, 2  ;;  %v1160_v46 = vadd.s32 %v5381_v49, %v5396_v59  ;;  %v1172_v33 = vclz %v3695_v55 }
 0x15f   : > { %v1043_v56 = vsel %vm1035_vm10, %v1026_v19, %v1042_v45  ;;  %v1049_v35 = vshll.u32 %v1009_v6, 8  ;;  %vm784_vm14 = vweird.f32 %v5045_v50  ;;  %vm1034_vm15 = vcmp.lt.s32.totalorder %v1014_v15, 2 }
 0x160   : > { %v1037_v61 = vsel %vm1033_vm1, %v1017_v8, %v1020_v21  ;;  %v1039_v44 = vsel %vm1035_vm10, %v1023_v42, %v1038_v60  ;;  %v1045_v57 = vsel %vm1033_vm1, %v1023_v42, %v1026_v19  ;;  %v1828_v5 = vsel %vm990_vm9, nan, %v1827_v16 }
 0x161   : > { %v3696_v58 = vadd.s32 4294967294, %v1172_v33  ;;  %v1044_v14 = vsel %vm1034_vm15, %v1041_v27, %v1043_v56  ;;  %v1046_v49 = vsel %vm1036_vm6, %v1032_v12, 1326507024  ;;  %v1314_v3 = vshrl.u32 %v1313_v10, 23  ;;  %v4401_v31 = vpop.eup %4400 }
 0x162   : > { %v1047_v59 = vsel %vm1035_vm10, %v1029_v47, %v1046_v49  ;;  %v5501_v53 = vmul.u32.u64.low %v1049_v35, %v1044_v14  ;;  %v5502_v63 = vmul.u32.u64.high %v1049_v35, %v1044_v14, %v5501_v53  ;;  %v1190_v11 = vsub.s32 4, %v5450_v17  ;;  %v4403_v51 = vpop.eup %4402 }
 0x163   : > { %vm3697_vm2 = vcmp.lt.s32.totalorder %v3696_v58, 0  ;;  %v1040_v1 = vsel %vm1034_vm15, %v1037_v61, %v1039_v44  ;;  %v1048_v43 = vsel %vm1034_vm15, %v1045_v57, %v1047_v59  ;;  %v791_v62 = vxor.u32 2147483648, %v4401_v31  ;;  %v568_v57 = vpop.permute.xlu0 %567 }
 0x164   : > { %v1175_v25 = vsel %vm3697_vm2, 0, %v3696_v58  ;;  %v5506_v7 = vmul.u32.u64.low %v1049_v35, %v1048_v43  ;;  %v5507_v18 = vmul.u32.u64.high %v1049_v35, %v1048_v43, %v5506_v7  ;;  %v788_v36 = vxor.u32 2147483648, %v4403_v51 }
 0x165   : > { %v1176_v15 = vsub.s32 32, %v1175_v25  ;;  %v1177_v21 = vshll.u32 %v5466_v38, %v1175_v25  ;;  %v1180_v42 = vsub.s32 4294967266, %v1175_v25  ;;  %v792_v19 = vsel %vm790_vm12, %v791_v62, %v4403_v51 }
 0x166   : > { %v1618_v47 = vsel %vm1616_vm13, %v791_v62, %v4403_v51  ;;  %v1059_v48 = vadd.s32 1, %v5502_v63  ;;  %v3702_v9 = vadd.s32 4294967169, %v1314_v3  ;;  %v789_v6 = vsel %vm787_vm7, %v4401_v31, %v788_v36 }
 0x167   : > { %v1615_v23 = vsel %vm1613_vm8, %v4401_v31, %v788_v36  ;;  %v1178_v16 = vshrl.u32 %v1160_v46, %v1176_v15  ;;  %v1181_v8 = vadd.s32 127, %v1180_v42  ;;  %v793_v38 = vsel %vm786_vm11, %v789_v6, %v792_v19 }
 0x168   : > { %v1619_v10 = vsel %vm1612_vm3, %v1615_v23, %v1618_v47  ;;  %v1056_v55 = vmul.u32 %v1049_v35, %v1040_v1  ;;  %vm1058_vm9 = vc.u32 %v5507_v18, %v5501_v53  ;;  %v794_v12 = vsel %vm784_vm14, nan, %v793_v38 }
 0x169   : > { %v1620_v60 = vsel %vm784_vm14, nan, %v1619_v10  ;;  %v1179_v27 = vor.u32 %v1178_v16, %v1177_v21  ;;  %v1182_v45 = vshll.u32 %v1181_v8, 23  ;;  %v5533_v52 = vpack.c.bf16 %v794_v12, %v5270_v39 }
 0x16a   : > { %v5530_v46 = vpack.c.bf16 %v1620_v60, %v5471_v13  ;;  %v1060_v0 = vsel %vm1058_vm9, %v1059_v48, %v5502_v63  ;;  %v1320_v33 = vadd.s32 1, %v3702_v9  ;;  %v1724_v56 = vsel %vm887_vm0, nan, %v5434_v32 }
 0x16b   : > { %vm1106_vm4 = vcmp.lt.s32.totalorder %v5174_v29, 0  ;;  %v1183_v35 = vor.u32 4788187, %v1182_v45  ;;  %v1061_v50 = vadd.s32 %v1060_v0, %v1056_v55  ;;  %v5540_v61 = vpack.c.bf16 %v1828_v5, %v1724_v56 }
 0x16c   : > { %v1191_v13 = vsel %vm1106_vm4, %v1190_v11, %v5450_v17  ;;  %vm1321_vm5 = vcmp.gt.s32.totalorder %v1320_v33, 0  ;;  %4135 = vmatprep.subr.bf16.mxu0 %v5530_v46  ;;  %4167 = vmatprep.subr.bf16.mxu1 %v5530_v46  ;;  %v1186_v44 = vcvt.s32.f32 %v1179_v27  ;;  %vm5551_vm0 = vcmp.le.f32.partialorder %v1104_v2, 0.7853982  ;;  %v4484_v2 = vld [vmem:[%s4956_s30] ss:$0 sm:$0xff]  ;;  %s6208_s30 = sld [smem:[#allocation19_spill]] }
 0x16d   : > { %v1184_v39 = vand.u32 2147483647, %v1183_v35  ;;  %v1062_v54 = vadd.s32 536870912, %v1061_v50  ;;  %v1322_v32 = vsel %vm1321_vm5, %v1320_v33, 0  ;;  %4137 = vmatpush3.bf16.msra.mxu0 %v5530_v46  ;;  %4169 = vmatpush3.bf16.msra.mxu1 %v5530_v46  ;;  %v1317_v17 = vand.u32 8388607, %v1310_v40 }
 0x16e   : > { %v1324_v58 = vand.u32 31, %v1322_v32  ;;  %4139 = vmatprep.subr.bf16.mxu0 %v5540_v61  ;;  %4171 = vmatprep.subr.bf16.mxu1 %v5540_v61  ;;  %v5561_v49 = vsel %vm5551_vm0, 0, %v1191_v13  ;;  %v5566_v3 = vmul.f32 %v4484_v2, %v568_v57  ;;  %v1323_v6 = vshrl.u32 %v1322_v32, 5 }
 0x16f   : > { %v1187_v14 = vmul.f32 %v1186_v44, %v1184_v39  ;;  %v5563_v59 = vshrl.u32 %v1062_v54, 30  ;;  %v5572_v1 = vand.u32 3, %v5561_v49  ;;  %v1318_v43 = vor.u32 8388608, %v1317_v17 }
 0x170   : > { %v1325_v63 = vsub.s32 32, %v1324_v58  ;;  %v1327_v21 = vshll.u32 %v4618_v20, %v1324_v58  ;;  %v1210_v19 = vand.u32 2139095040, %v5566_v3  ;;  %v1330_v48 = vshll.u32 %v4619_v22, %v1324_v58 }
 0x171   : > { %v1188_v31 = vxor.u32 2147483648, %v1187_v14  ;;  %v1064_v11 = vshll.u32 %v5563_v59, 30  ;;  %4141 = vmatpush3.bf16.msra.mxu0 %v5540_v61  ;;  %4173 = vmatpush3.bf16.msra.mxu1 %v5540_v61  ;;  %v1336_v9 = vshll.u32 %v4621_v26, %v1324_v58  ;;  %v1333_v23 = vshll.u32 %v4620_v24, %v1324_v58 }
 0x172   : > { %v1328_v51 = vshrl.u32 %v4619_v22, %v1325_v63  ;;  %v1331_v7 = vshrl.u32 %v4620_v24, %v1325_v63  ;;  %v1337_v36 = vshrl.u32 %v4622_v28, %v1325_v63  ;;  %v1334_v42 = vshrl.u32 %v4621_v26, %v1325_v63  ;;  %s6106_s27 = scalar_lea.hbm %s6208_s30, %s3795_s26 }
 0x173   : > { %v1189_v62 = vsel %vm1106_vm4, %v1188_v31, %v1187_v14  ;;  %v5577_v25 = vsub.s32 %v1061_v50, %v1064_v11  ;;  %v1057_v55 = vadd.s32 %v5501_v53, %v5507_v18  ;;  %v1339_v60 = vshll.u32 %v4622_v28, %v1324_v58 }
 0x174   : > { %v1192_v15 = vsel %vm5551_vm0, %v5174_v29, %v1189_v62  ;;  %v1329_v8 = vor.u32 %v1328_v51, %v1327_v21  ;;  %v1332_v38 = vor.u32 %v1331_v7, %v1330_v48  ;;  %v1338_v10 = vor.u32 %v1337_v36, %v1336_v9 }
 0x175   : > { %4404 = vcosq.f32 %v1192_v15  ;;  %v1067_v47 = vsub.s32 0, %v5577_v25  ;;  %v1335_v12 = vor.u32 %v1334_v42, %v1333_v23  ;;  %v1340_v27 = vshrl.u32 %v4623_v37, %v1325_v63 }
 0x176   : > { %4406 = vsinq.f32 %v1192_v15  ;;  %vm1202_vm12 = vcmp.eq.s32.totalorder %v5572_v1, 2  ;;  %v1087_v0 = vsub.s32 4, %v5563_v59  ;;  %v5598_v33 = vshll.u32 %v1318_v43, 8 }
 0x177   : > { %v3691_v16 = vmin.u32 %v1067_v47, %v5577_v25  ;;  %v1211_v56 = vshrl.u32 %v1210_v19, 23  ;;  %vm1199_vm13 = vcmp.eq.s32.totalorder %v5572_v1, 0  ;;  %v1341_v35 = vor.u32 %v1340_v27, %v1339_v60 }
 0x178   : > { %vm1342_vm1 = vcmp.lt.s32.totalorder %v1323_v6, 1  ;;  %vm1343_vm6 = vcmp.lt.s32.totalorder %v1323_v6, 2  ;;  %vm1345_vm7 = vcmp.lt.s32.totalorder %v1323_v6, 4  ;;  %vm1344_vm8 = vcmp.lt.s32.totalorder %v1323_v6, 3 }
 0x179   : > { %v1069_v45 = vclz %v3691_v16  ;;  %v1350_v18 = vsel %vm1342_vm1, %v1329_v8, %v1332_v38  ;;  %v1351_v50 = vsel %vm1345_vm7, %v1338_v10, 920167782  ;;  %vm1196_vm10 = vweird.f32 %v5174_v29 }
 0x17a   : > { %vm1003_vm11 = vcmp.lt.s32.totalorder %v5295_v34, 0  ;;  %v1347_v13 = vsel %vm1345_vm7, %v1335_v12, 2102212464  ;;  %v1352_v39 = vsel %vm1344_vm8, %v1335_v12, %v1351_v50  ;;  %v1354_v44 = vsel %vm1342_vm1, %v1332_v38, %v1335_v12 }
 0x17b   : > { %v3692_v53 = vadd.s32 4294967294, %v1069_v45  ;;  %v1355_v54 = vsel %vm1345_vm7, %v1341_v35, 1326507024  ;;  %v1326_v32 = vshrl.u32 %v4618_v20, %v1325_v63  ;;  %v1353_v57 = vsel %vm1343_vm6, %v1350_v18, %v1352_v39  ;;  %v2592_v45 = vld [vmem:[%s6154_s6] sm:$0xff] }
 0x17c   : > { %v1356_v5 = vsel %vm1344_vm8, %v1338_v10, %v1355_v54  ;;  %v5611_v14 = vmul.u32.u64.low %v5598_v33, %v1353_v57  ;;  %v5612_v2 = vmul.u32.u64.high %v5598_v33, %v1353_v57, %v5611_v14  ;;  %v1348_v63 = vsel %vm1344_vm8, %v1332_v38, %v1347_v13 }
 0x17d   : > { %vm3693_vm3 = vcmp.lt.s32.totalorder %v3692_v53, 0  ;;  %v1357_v58 = vsel %vm1343_vm6, %v1354_v44, %v1356_v5  ;;  %v1346_v51 = vsel %vm1342_vm1, %v1326_v32, %v1329_v8  ;;  %v3698_v21 = vadd.s32 4294967169, %v1211_v56 }
 0x17e   : > { %v1072_v17 = vsel %vm3693_vm3, 0, %v3692_v53  ;;  %v5623_v36 = vmul.u32.u64.low %v5598_v33, %v1357_v58  ;;  %v5624_v15 = vmul.u32.u64.high %v5598_v33, %v1357_v58, %v5623_v36  ;;  %v1349_v23 = vsel %vm1343_vm6, %v1346_v51, %v1348_v63 }
 0x17f   : > { %v5615_v31 = vpop.eup %4404  ;;  %v1073_v11 = vsub.s32 32, %v1072_v17  ;;  %v1077_v43 = vsub.s32 4294967266, %v1072_v17  ;;  %v1074_v19 = vshll.u32 %v5577_v25, %v1072_v17  ;;  %v1368_v16 = vadd.s32 1, %v5612_v2 }
 0x180   : > { %v5619_v62 = vpop.eup %4406  ;;  %v1203_v7 = vxor.u32 2147483648, %v5615_v31  ;;  %v1217_v8 = vadd.s32 1, %v3698_v21  ;;  %vm1198_vm14 = vcmp.lt.s32.totalorder %v5572_v1, 2  ;;  %v2026_v12 = vadd.s32 3, %v5561_v49 }
 0x181   : > { %v1200_v42 = vxor.u32 2147483648, %v5619_v62  ;;  %v1075_v47 = vshrl.u32 %v1057_v55, %v1073_v11  ;;  %v1078_v48 = vadd.s32 127, %v1077_v43  ;;  %vm5644_vm15 = vcmp.le.f32.partialorder %v1001_v4, 0.7853982  ;;  %v2253_v4 = vld [vmem:[%s6151_s3] sm:$0xff] }
 0x182   : > { %v1204_v9 = vsel %vm1202_vm12, %v1203_v7, %v5619_v62  ;;  %vm1367_vm2 = vc.u32 %v5624_v15, %v5611_v14  ;;  %v1088_v27 = vsel %vm1003_vm11, %v1087_v0, %v5563_v59  ;;  %v1365_v49 = vmul.u32 %v5598_v33, %v1349_v23 }
 0x183   : > { %v1201_v25 = vsel %vm1199_vm13, %v5615_v31, %v1200_v42  ;;  %v1076_v38 = vor.u32 %v1075_v47, %v1074_v19  ;;  %v1079_v10 = vshll.u32 %v1078_v48, 23  ;;  %v1369_v35 = vsel %vm1367_vm2, %v1368_v16, %v5612_v2 }
 0x184   : > { %v1205_v55 = vsel %vm1198_vm14, %v1201_v25, %v1204_v9  ;;  %v1207_v53 = vand.u32 2147483647, %v5566_v3  ;;  %vm1218_vm9 = vcmp.gt.s32.totalorder %v1217_v8, 0  ;;  %v1370_v50 = vadd.s32 %v1369_v35, %v1365_v49 }
 0x185   : > { %v5652_v60 = vsel %vm1196_vm10, nan, %v1205_v55  ;;  %v1080_v1 = vor.u32 4788187, %v1079_v10  ;;  %v1083_v56 = vcvt.s32.f32 %v1076_v38  ;;  %v1219_v13 = vsel %vm1218_vm9, %v1217_v8, 0 }
 0x186   : > { %vm2261_vm4 = vcmask 523264   ;;  %v1090_v59 = vsel %vm5644_vm15, 0, %v1088_v27  ;;  %v1221_v0 = vand.u32 31, %v1219_v13  ;;  %v1371_v39 = vadd.s32 536870912, %v1370_v50 }
 0x187   : > { %v1081_v18 = vand.u32 2147483647, %v1080_v1  ;;  %3935 = vmatprep.mubr.msk.f32.mxu0 %vm2261_vm4, %v2253_v4  ;;  %3991 = vmatprep.mubr.msk.f32.mxu1 %vm2261_vm4, %v2592_v45  ;;  %v2027_v44 = vand.u32 3, %v2026_v12  ;;  %v5670_v57 = vand.u32 3, %v1090_v59  ;;  %v1214_v17 = vand.u32 8388607, %v1207_v53 }
 0x188   : > { %v1222_v54 = vsub.s32 32, %v1221_v0  ;;  %v5672_v5 = vshrl.u32 %v1371_v39, 30  ;;  %v1922_v58 = vadd.s32 3, %v1090_v59  ;;  %v1224_v2 = vshll.u32 %v4618_v20, %v1221_v0 }
 0x189   : > { %v1084_v33 = vmul.f32 %v1083_v56, %v1081_v18  ;;  %v5687_v47 = vshrl.u32 %v1219_v13, 5  ;;  %v1227_v48 = vshll.u32 %v4619_v22, %v1221_v0  ;;  %v1233_v9 = vshll.u32 %v4621_v26, %v1221_v0 }
 0x18a   : > { %v1225_v11 = vshrl.u32 %v4619_v22, %v1222_v54  ;;  %v1228_v43 = vshrl.u32 %v4620_v24, %v1222_v54  ;;  %v1373_v63 = vshll.u32 %v5672_v5, 30  ;;  %v1231_v36 = vshrl.u32 %v4621_v26, %v1222_v54 }
 0x18b   : > { %v1085_v32 = vxor.u32 2147483648, %v1084_v33  ;;  %v1234_v21 = vshrl.u32 %v4622_v28, %v1222_v54  ;;  %v1230_v8 = vshll.u32 %v4620_v24, %v1221_v0  ;;  %v1237_v10 = vshrl.u32 %v4623_v37, %v1222_v54 }
 0x18c   : > { %v5691_v23 = vsub.s32 %v1370_v50, %v1373_v63  ;;  %v1226_v16 = vor.u32 %v1225_v11, %v1224_v2  ;;  %v1229_v25 = vor.u32 %v1228_v43, %v1227_v48  ;;  %v1923_v55 = vand.u32 3, %v1922_v58 }
 0x18d   : > { %v1086_v51 = vsel %vm1003_vm11, %v1085_v32, %v1084_v33  ;;  %v1235_v38 = vor.u32 %v1234_v21, %v1233_v9  ;;  %v1232_v6 = vor.u32 %v1231_v36, %v1230_v8  ;;  %v1236_v1 = vshll.u32 %v4622_v28, %v1221_v0 }
 0x18e   : > { %v1089_v19 = vsel %vm5644_vm15, %v5295_v34, %v1086_v51  ;;  %v1376_v12 = vsub.s32 0, %v5691_v23  ;;  %vm2028_vm5 = vcmp.lt.s32.totalorder %v2027_v44, 2  ;;  %vm2029_vm0 = vcmp.eq.s32.totalorder %v2027_v44, 0 }
 0x18f   : > { %4408 = vcosq.f32 %v1089_v19  ;;  %vm2032_vm12 = vcmp.eq.s32.totalorder %v2027_v44, 2  ;;  %v1215_v22 = vor.u32 8388608, %v1214_v17  ;;  %v1238_v27 = vor.u32 %v1237_v10, %v1236_v1 }
 0x190   : > { %4410 = vsinq.f32 %v1089_v19  ;;  %v3703_v26 = vmin.u32 %v1376_v12, %v5691_v23  ;;  %vm1239_vm13 = vcmp.lt.s32.totalorder %v5687_v47, 1  ;;  %vm1242_vm1 = vcmp.lt.s32.totalorder %v5687_v47, 4 }
 0x191   : > { %vm1096_vm6 = vcmp.eq.s32.totalorder %v5670_v57, 0  ;;  %vm1099_vm7 = vcmp.eq.s32.totalorder %v5670_v57, 2  ;;  %vm1241_vm8 = vcmp.lt.s32.totalorder %v5687_v47, 3  ;;  %v1247_v24 = vsel %vm1239_vm13, %v1226_v16, %v1229_v25 }
 0x192   : > { %v1248_v28 = vsel %vm1242_vm1, %v1235_v38, 920167782  ;;  %v2031_v37 = vsel %vm2029_vm0, %v5615_v31, %v1200_v42  ;;  %v2034_v49 = vsel %vm2032_vm12, %v1203_v7, %v5619_v62  ;;  %vm1095_vm11 = vcmp.lt.s32.totalorder %v5670_v57, 2 }
 0x193   : > { %vm1924_vm3 = vcmp.lt.s32.totalorder %v1923_v55, 2  ;;  %v1378_v4 = vclz %v3703_v26  ;;  %v1249_v45 = vsel %vm1241_vm8, %v1232_v6, %v1248_v28  ;;  %vm1240_vm14 = vcmp.lt.s32.totalorder %v5687_v47, 2 }
 0x194   : > { %v1244_v56 = vsel %vm1242_vm1, %v1232_v6, 2102212464  ;;  %v1251_v35 = vsel %vm1239_vm13, %v1229_v25, %v1232_v6  ;;  %v1255_v42 = vshll.u32 %v1215_v22, 8  ;;  %v1223_v31 = vshrl.u32 %v4618_v20, %v1222_v54 }
 0x195   : > { %v3704_v18 = vadd.s32 4294967294, %v1378_v4  ;;  %v1250_v62 = vsel %vm1240_vm14, %v1247_v24, %v1249_v45  ;;  %v1252_v7 = vsel %vm1242_vm1, %v1238_v27, 1326507024  ;;  %v2035_v50 = vsel %vm2028_vm5, %v2031_v37, %v2034_v49 }
 0x196   : > { %v1253_v13 = vsel %vm1241_vm8, %v1235_v38, %v1252_v7  ;;  %v5729_v59 = vmul.u32.u64.low %v1255_v42, %v1250_v62  ;;  %v5730_v0 = vmul.u32.u64.high %v1255_v42, %v1250_v62, %v5729_v59  ;;  %v1243_v20 = vsel %vm1239_vm13, %v1223_v31, %v1226_v16 }
 0x197   : > { %vm3705_vm15 = vcmp.lt.s32.totalorder %v3704_v18, 0  ;;  %v1245_v39 = vsel %vm1241_vm8, %v1229_v25, %v1244_v56  ;;  %v1254_v54 = vsel %vm1240_vm14, %v1251_v35, %v1253_v13  ;;  %vm1925_vm2 = vcmp.eq.s32.totalorder %v1923_v55, 0  ;;  %v2596_v13 = vld [vmem:[%s6154_s6 + $0x20] sm:$0xff] }
 0x198   : > { %v1381_v17 = vsel %vm3705_vm15, 0, %v3704_v18  ;;  %v5739_v58 = vmul.u32.u64.low %v1255_v42, %v1254_v54  ;;  %v5740_v2 = vmul.u32.u64.high %v1255_v42, %v1254_v54, %v5739_v58  ;;  %vm1928_vm9 = vcmp.eq.s32.totalorder %v1923_v55, 2 }
 0x199   : > { %v4409_v33 = vpop.eup %4408  ;;  %v1386_v43 = vsub.s32 4294967266, %v1381_v17  ;;  %v1246_v36 = vsel %vm1240_vm14, %v1243_v20, %v1245_v39  ;;  %v1265_v21 = vadd.s32 1, %v5730_v0  ;;  %v2036_v19 = vsel %vm1196_vm10, nan, %v2035_v50 }
 0x19a   : > { %v4411_v44 = vpop.eup %4410  ;;  %v1100_v32 = vxor.u32 2147483648, %v4409_v33  ;;  %vm1093_vm5 = vweird.f32 %v5295_v34  ;;  %vm1264_vm0 = vc.u32 %v5740_v2, %v5729_v59  ;;  %v1382_v10 = vsub.s32 32, %v1381_v17 }
 0x19b   : > { %v1097_v11 = vxor.u32 2147483648, %v4411_v44  ;;  %v1387_v16 = vadd.s32 127, %v1386_v43  ;;  %v1262_v29 = vmul.u32 %v1255_v42, %v1246_v36  ;;  %v1266_v1 = vsel %vm1264_vm0, %v1265_v21, %v5730_v0 }
 0x19c   : > { %v1101_v51 = vsel %vm1099_vm7, %v1100_v32, %v4411_v44  ;;  %v1930_v63 = vsel %vm1928_vm9, %v1100_v32, %v4411_v44  ;;  %v1366_v34 = vadd.s32 %v5611_v14, %v5624_v15  ;;  %vm1312_vm12 = vcmp.lt.s32.totalorder %v5448_v30, 0 }
 0x19d   : > { %v1098_v48 = vsel %vm1096_vm6, %v4409_v33, %v1097_v11  ;;  %v1927_v9 = vsel %vm1925_vm2, %v4409_v33, %v1097_v11  ;;  %v1388_v57 = vshll.u32 %v1387_v16, 23  ;;  %v1267_v55 = vadd.s32 %v1266_v1, %v1262_v29 }
 0x19e   : > { %v1102_v8 = vsel %vm1095_vm11, %v1098_v48, %v1101_v51  ;;  %v1931_v25 = vsel %vm1924_vm3, %v1927_v9, %v1930_v63  ;;  %v1384_v22 = vshrl.u32 %v1366_v34, %v1382_v10  ;;  %v1263_v62 = vadd.s32 %v5729_v59, %v5740_v2 }
 0x19f   : > { %v1103_v47 = vsel %vm1093_vm5, nan, %v1102_v8  ;;  %v1932_v38 = vsel %vm1093_vm5, nan, %v1931_v25  ;;  %v1268_v26 = vadd.s32 536870912, %v1267_v55  ;;  %v1389_v27 = vor.u32 4788187, %v1388_v57 }
 0x1a0   : > { %v5757_v12 = vpack.c.bf16 %v2036_v19, %v1932_v38  ;;  %v5760_v6 = vpack.c.bf16 %v5652_v60, %v1103_v47  ;;  %v1383_v60 = vshll.u32 %v5691_v23, %v1381_v17  ;;  %vm5777_vm13 = vcmp.le.f32.partialorder %v1310_v40, 0.7853982 }
 0x1a1   : > { %v1269_v24 = vshrl.u32 %v1268_v26, 30  ;;  %v1390_v49 = vand.u32 2147483647, %v1389_v27  ;;  %v1396_v32 = vsub.s32 4, %v5672_v5  ;;  %vm1209_vm1 = vcmp.lt.s32.totalorder %v5566_v3, 0 }
 0x1a2   : > { %4143 = vmatprep.subr.bf16.mxu0 %v5757_v12  ;;  %4175 = vmatprep.subr.bf16.mxu1 %v5757_v12  ;;  %v1385_v28 = vor.u32 %v1384_v22, %v1383_v60  ;;  %vm1208_vm6 = vcmp.le.f32.partialorder %v1207_v53, 0.7853982  ;;  %vm1402_vm14 = vweird.f32 %v5448_v30  ;;  %vm1299_vm9 = vweird.f32 %v5566_v3 }
 0x1a3   : > { %4145 = vmatpush3.bf16.msra.mxu0 %v5757_v12  ;;  %4177 = vmatpush3.bf16.msra.mxu1 %v5757_v12  ;;  %v1270_v37 = vshll.u32 %v1269_v24, 30  ;;  %v1397_v40 = vsel %vm1312_vm12, %v1396_v32, %v5672_v5  ;;  %v1293_v11 = vsub.s32 4, %v1269_v24  ;;  %v2599_v32 = vld [vmem:[%s6154_s6 + $0x38] sm:$0xff] }
 0x1a4   : > { %v1392_v15 = vcvt.s32.f32 %v1385_v28  ;;  %v1399_v43 = vsel %vm5777_vm13, 0, %v1397_v40  ;;  %v2585_v40 = vld [vmem:[%s6153_s5 + $0x8] sm:$0xff] }
 0x1a5   : > { %v1271_v14 = vsub.s32 %v1267_v55, %v1270_v37  ;;  %v1294_v36 = vsel %vm1209_vm1, %v1293_v11, %v1269_v24  ;;  %v2234_v21 = vadd.s32 3, %v1399_v43  ;;  %v1403_v28 = vand.u32 3, %v1399_v43  ;;  %v2586_v11 = vld [vmem:[%s6153_s5 + $0x10] sm:$0xff]  ;;  %v2248_v43 = vld [vmem:[%s6150_s2 + $0x18] sm:$0xff] }
 0x1a6   : > { %v1393_v45 = vmul.f32 %v1392_v15, %v1390_v49  ;;  %v1296_v5 = vsel %vm1208_vm6, 0, %v1294_v36  ;;  %v2593_v15 = vld [vmem:[%s6154_s6 + $0x8] sm:$0xff] }
 0x1a7   : > { %v1273_v4 = vsub.s32 0, %v1271_v14  ;;  %v2235_v16 = vand.u32 3, %v2234_v21  ;;  %v2130_v47 = vadd.s32 3, %v1296_v5  ;;  %v1300_v37 = vand.u32 3, %v1296_v5  ;;  %v2250_v36 = vld [vmem:[%s6150_s2 + $0x28] sm:$0xff] }
 0x1a8   : > { %v1394_v42 = vxor.u32 2147483648, %v1393_v45  ;;  %vm1405_vm5 = vcmp.eq.s32.totalorder %v1403_v28, 0  ;;  %vm1408_vm0 = vcmp.eq.s32.totalorder %v1403_v28, 2  ;;  %v2589_v21 = vld [vmem:[%s6153_s5 + $0x28] sm:$0xff] }
 0x1a9   : > { %v3699_v56 = vmin.u32 %v1273_v4, %v1271_v14  ;;  %vm2237_vm7 = vcmp.eq.s32.totalorder %v2235_v16, 0  ;;  %vm2240_vm8 = vcmp.eq.s32.totalorder %v2235_v16, 2  ;;  %v2131_v29 = vand.u32 3, %v2130_v47  ;;  %v2938_v5 = vld [vmem:[#allocation3] sm:$0xff]  ;;  %v2943_v47 = vld [vmem:[#allocation3 + $0x28] sm:$0xff] }
 0x1aa   : > { %v1395_v23 = vsel %vm1312_vm12, %v1394_v42, %v1393_v45  ;;  %vm2236_vm11 = vcmp.lt.s32.totalorder %v2235_v16, 2  ;;  %vm1305_vm12 = vcmp.eq.s32.totalorder %v1300_v37, 2  ;;  %v2255_v42 = vld [vmem:[%s6151_s3 + $0x10] sm:$0xff] }
 0x1ab   : > { %v1275_v35 = vclz %v3699_v56  ;;  %v1398_v39 = vsel %vm5777_vm13, %v5448_v30, %v1395_v23  ;;  %vm2136_vm3 = vcmp.eq.s32.totalorder %v2131_v29, 2  ;;  %vm2133_vm15 = vcmp.eq.s32.totalorder %v2131_v29, 0  ;;  %v2595_v23 = vld [vmem:[%s6154_s6 + $0x18] sm:$0xff] }
 0x1ac   : > { %4412 = vcosq.f32 %v1398_v39  ;;  %vm2132_vm2 = vcmp.lt.s32.totalorder %v2131_v29, 2  ;;  %vm1404_vm13 = vcmp.lt.s32.totalorder %v1403_v28, 2  ;;  %v2940_v16 = vld [vmem:[#allocation3 + $0x10] sm:$0xff] }
 0x1ad   : > { %v3700_v18 = vadd.s32 4294967294, %v1275_v35  ;;  %4414 = vsinq.f32 %v1398_v39  ;;  %v2597_v39 = vld [vmem:[%s6154_s6 + $0x28] sm:$0xff]  ;;  %v2933_v29 = vld [vmem:[%s6156_s8 + $0x18] sm:$0xff] }
 0x1af   : > { %vm3701_vm10 = vcmp.lt.s32.totalorder %v3700_v18, 0 }
 0x1b0   : > { %v1278_v31 = vsel %vm3701_vm10, 0, %v3700_v18  ;;  %vm1302_vm10 = vcmp.eq.s32.totalorder %v1300_v37, 0  ;;  %v2594_v18 = vld [vmem:[%s6154_s6 + $0x10] sm:$0xff] }
 0x1b1   : > { %v1279_v7 = vsub.s32 32, %v1278_v31  ;;  %v1283_v50 = vsub.s32 4294967266, %v1278_v31  ;;  %v1280_v0 = vshll.u32 %v1271_v14, %v1278_v31  ;;  %v2254_v14 = vld [vmem:[%s6151_s3 + $0x8] sm:$0xff]  ;;  %v2256_v31 = vld [vmem:[%s6151_s3 + $0x18] sm:$0xff] }
 0x1b3   : > { %v1281_v33 = vshrl.u32 %v1263_v62, %v1279_v7  ;;  %v1284_v20 = vadd.s32 127, %v1283_v50  ;;  %v2257_v50 = vld [vmem:[%s6151_s3 + $0x20] sm:$0xff] }
 0x1b5   : > { %v1282_v54 = vor.u32 %v1281_v33, %v1280_v0  ;;  %v1285_v44 = vshll.u32 %v1284_v20, 23  ;;  %v2258_v20 = vld [vmem:[%s6151_s3 + $0x28] sm:$0xff] }
 0x1b6   : > { %v4413_v48 = vpop.eup %4412 }
 0x1b7   : > { %v1286_v59 = vor.u32 4788187, %v1285_v44  ;;  %v1289_v58 = vcvt.s32.f32 %v1282_v54  ;;  %v4415_v9 = vpop.eup %4414  ;;  %v1409_v25 = vxor.u32 2147483648, %v4413_v48  ;;  %v2598_v54 = vld [vmem:[%s6154_s6 + $0x30] sm:$0xff]  ;;  %v2260_v44 = vld [vmem:[%s6151_s3 + $0x38] sm:$0xff] }
 0x1b8   : > { %v1406_v8 = vxor.u32 2147483648, %v4415_v9 }
 0x1b9   : > { %v1287_v17 = vand.u32 2147483647, %v1286_v59  ;;  %v2242_v10 = vsel %vm2240_vm8, %v1409_v25, %v4415_v9  ;;  %v1410_v45 = vsel %vm1408_vm0, %v1409_v25, %v4415_v9  ;;  %v2245_v59 = vld [vmem:[%s6150_s2] sm:$0xff]  ;;  %v2591_v9 = vld [vmem:[%s6153_s5 + $0x38] sm:$0xff] }
 0x1ba   : > { %v2239_v38 = vsel %vm2237_vm7, %v4413_v48, %v1406_v8  ;;  %v1407_v4 = vsel %vm1405_vm5, %v4413_v48, %v1406_v8  ;;  %v2252_v48 = vld [vmem:[%s6150_s2 + $0x38] sm:$0xff]  ;;  %v2942_v25 = vld [vmem:[#allocation3 + $0x20] sm:$0xff] }
 0x1bb   : > { %v1290_v2 = vmul.f32 %v1289_v58, %v1287_v17  ;;  %v2243_v34 = vsel %vm2236_vm11, %v2239_v38, %v2242_v10  ;;  %v1411_v62 = vsel %vm1404_vm13, %v1407_v4, %v1410_v45  ;;  %v2584_v17 = vld [vmem:[%s6153_s5] sm:$0xff]  ;;  %v2246_v58 = vld [vmem:[%s6150_s2 + $0x8] sm:$0xff]  ;;  %v2944_v38 = vld [vmem:[#allocation3 + $0x30] sm:$0xff] }
 0x1bc   : > { %v2244_v26 = vsel %vm1402_vm14, nan, %v2243_v34  ;;  %v1412_v0 = vsel %vm1402_vm14, nan, %v1411_v62  ;;  %v2941_v8 = vld [vmem:[#allocation3 + $0x18] sm:$0xff]  ;;  %v2936_v34 = vld [vmem:[%s6156_s8 + $0x30] sm:$0xff] }
 0x1bd   : > { %v1291_v51 = vxor.u32 2147483648, %v1290_v2  ;;  %v2930_v10 = vld [vmem:[%s6156_s8] sm:$0xff] }
 0x1bf   : > { %v1292_v63 = vsel %vm1209_vm1, %v1291_v51, %v1290_v2  ;;  %vm1301_vm1 = vcmp.lt.s32.totalorder %v1300_v37, 2  ;;  %v2247_v2 = vld [vmem:[%s6150_s2 + $0x10] sm:$0xff]  ;;  %v2587_v51 = vld [vmem:[%s6153_s5 + $0x18] sm:$0xff] }
 0x1c0   : > { %v1295_v19 = vsel %vm1208_vm6, %v5566_v3, %v1292_v63  ;;  %v2259_v3 = vld [vmem:[%s6151_s3 + $0x30] sm:$0xff]  ;;  %v2249_v63 = vld [vmem:[%s6150_s2 + $0x20] sm:$0xff]  ;;  %vm4625_vm6 = vmmov 0  }
 0x1c1   : > { %4416 = vcosq.f32 %v1295_v19 }
 0x1c2   : > { %4418 = vsinq.f32 %v1295_v19  ;;  %v2251_v19 = vld [vmem:[%s6150_s2 + $0x30] sm:$0xff] }
 0x1cb   : > { %v4417_v53 = vpop.eup %4416 }
 0x1cc   : > { %v4419_v1 = vpop.eup %4418  ;;  %v1306_v57 = vxor.u32 2147483648, %v4417_v53 }
 0x1cd   : > { %v1303_v55 = vxor.u32 2147483648, %v4419_v1 }
 0x1ce   : > { %v2138_v22 = vsel %vm2136_vm3, %v1306_v57, %v4419_v1  ;;  %v1307_v35 = vsel %vm1305_vm12, %v1306_v57, %v4419_v1  ;;  %v2935_v1 = vld [vmem:[%s6156_s8 + $0x28] sm:$0xff]  ;;  %v2937_v57 = vld [vmem:[%s6156_s8 + $0x38] sm:$0xff] }
 0x1cf   : > { %v2135_v60 = vsel %vm2133_vm15, %v4417_v53, %v1303_v55  ;;  %v1304_v56 = vsel %vm1302_vm10, %v4417_v53, %v1303_v55  ;;  %v2934_v53 = vld [vmem:[%s6156_s8 + $0x20] sm:$0xff] }
 0x1d0   : > { %v2139_v27 = vsel %vm2132_vm2, %v2135_v60, %v2138_v22  ;;  %v1308_v7 = vsel %vm1301_vm1, %v1304_v56, %v1307_v35  ;;  %v3284_v55 = vld [vmem:[#allocation6] sm:$0xff]  ;;  %v2536_v22 = vpop.permute.xlu1 %2535 }
 0x1d1   : > { %v2140_v24 = vsel %vm1299_vm9, nan, %v2139_v27  ;;  %v1309_v33 = vsel %vm1299_vm9, nan, %v1308_v7 }
 0x1d2   : > { %v5800_v49 = vpack.c.bf16 %v2244_v26, %v2140_v24  ;;  %v5858_v30 = vpack.c.bf16 %v1412_v0, %v1309_v33  ;;  %v2531_v26 = vpop.permute.xlu0 %2530 }
 0x1d4   : > { %4147 = vmatprep.subr.bf16.mxu0 %v5800_v49  ;;  %4179 = vmatprep.subr.bf16.mxu1 %v5800_v49  ;;  %v2874_v60 = vpop.permute.xlu1 %2873 }
 0x1d5   : > { %4149 = vmatpush3.bf16.msra.mxu0 %v5800_v49  ;;  %4181 = vmatpush3.bf16.msra.mxu1 %v5800_v49 }
 0x1d6   : > { %4151 = vmatprep.subr.bf16.mxu0 %v5533_v52  ;;  %4183 = vmatprep.subr.bf16.mxu1 %v5533_v52  ;;  %v2869_v27 = vpop.permute.xlu0 %2868 }
 0x1d8   : > { %3936 = vmatmul.mubr.msk.f32.vlgmr.msra.gmra.mrb[0].mxu0 %vm2261_vm4, %v2254_v14  ;;  %3992 = vmatmul.mubr.msk.f32.vlgmr.msra.gmra.mrb[0].mxu1 %vm2261_vm4, %v2593_v15  ;;  %v3220_v24 = vpop.permute.xlu1 %3219 }
 0x1d9   : > { %4153 = vmatpush3.bf16.msra.mxu0 %v5533_v52  ;;  %4185 = vmatpush3.bf16.msra.mxu1 %v5533_v52 }
 0x1da   : > { %4155 = vmatprep.subr.bf16.mxu0 %v5428_v41  ;;  %4187 = vmatprep.subr.bf16.mxu1 %v5428_v41  ;;  %v6005_v28 = vpop.permute.xlu0 %3214 }
 0x1db   : > { %3938 = vmatprep.mubr.msk.f32.mxu0 %vm2261_vm4, %v2255_v42  ;;  %3994 = vmatprep.mubr.msk.f32.mxu1 %vm2261_vm4, %v2594_v18 }
 0x1dc   : > { %3939 = vmatmul.mubr.msk.f32.gmra.mrb[2].mxu0 %vm2261_vm4, %v2256_v31  ;;  %3995 = vmatmul.mubr.msk.f32.gmra.mrb[2].mxu1 %vm2261_vm4, %v2595_v23  ;;  %v2546_v37 = vpop.permute.xlu1 %2545 }
 0x1dd   : > { %4157 = vmatpush3.bf16.msra.mxu0 %v5428_v41  ;;  %4189 = vmatpush3.bf16.msra.mxu1 %v5428_v41 }
 0x1de   : > { %4159 = vmatprep.subr.bf16.mxu0 %v5760_v6  ;;  %4191 = vmatprep.subr.bf16.mxu1 %v5760_v6 }
 0x1df   : > { %3941 = vmatprep.mubr.msk.f32.mxu0 %vm2261_vm4, %v2257_v50  ;;  %3997 = vmatprep.mubr.msk.f32.mxu1 %vm2261_vm4, %v2596_v13 }
 0x1e0   : > { %3942 = vmatmul.mubr.msk.f32.gmra.mrb[4].mxu0 %vm2261_vm4, %v2258_v20  ;;  %3998 = vmatmul.mubr.msk.f32.gmra.mrb[4].mxu1 %vm2261_vm4, %v2597_v39  ;;  %v2884_v14 = vpop.permute.xlu1 %2883 }
 0x1e1   : > { %4161 = vmatpush3.bf16.msra.mxu0 %v5760_v6  ;;  %4193 = vmatpush3.bf16.msra.mxu1 %v5760_v6 }
 0x1e2   : > { %4163 = vmatprep.subr.bf16.mxu0 %v5858_v30  ;;  %4195 = vmatprep.subr.bf16.mxu1 %v5858_v30 }
 0x1e3   : > { %3944 = vmatprep.mubr.msk.f32.mxu0 %vm2261_vm4, %v2259_v3  ;;  %4000 = vmatprep.mubr.msk.f32.mxu1 %vm2261_vm4, %v2598_v54 }
 0x1e4   : > { %3945 = vmatmul.mubr.msk.f32.gmra.mrb[6].mxu0 %vm2261_vm4, %v2260_v44  ;;  %4001 = vmatmul.mubr.msk.f32.gmra.mrb[6].mxu1 %vm2261_vm4, %v2599_v32  ;;  %v6007_v4 = vpop.permute.xlu1 %3229 }
 0x1e5   : > { %4165 = vmatpush3.bf16.msra.mxu0 %v5858_v30  ;;  %4197 = vmatpush3.bf16.msra.mxu1 %v5858_v30 }
 0x1e6   : > { %4199 = vmatprep.subr.bf16.mxu0 %v5530_v46  ;;  %3963 = vmatprep.mubr.msk.f32.mxu0 %vm2261_vm4, %v2245_v59 }
 0x1e7   : > { %4019 = vmatprep.mubr.msk.f32.mxu1 %vm2261_vm4, %v2584_v17 }
 0x1e8   : > { %3964 = vmatmul.mubr.msk.f32.vlgmr.msra.gmra.mrb[0].mxu0 %vm2261_vm4, %v2246_v58  ;;  %4020 = vmatmul.mubr.msk.f32.vlgmr.msra.gmra.mrb[0].mxu1 %vm2261_vm4, %v2585_v40  ;;  %v2556_v50 = vpop.permute.xlu1 %2555 }
 0x1e9   : > { %4201 = vmatpush3.bf16.msra.mxu0 %v5530_v46  ;;  %3966 = vmatprep.mubr.msk.f32.mxu0 %vm2261_vm4, %v2247_v2  ;;  %v2588_v46 = vld [vmem:[%s6153_s5 + $0x20] sm:$0xff] }
 0x1ea   : > { %4203 = vmatprep.subr.bf16.mxu0 %v5540_v61  ;;  %4022 = vmatprep.mubr.msk.f32.mxu1 %vm2261_vm4, %v2586_v11 }
 0x1ec   : > { %3967 = vmatmul.mubr.msk.f32.gmra.mrb[2].mxu0 %vm2261_vm4, %v2248_v43  ;;  %4023 = vmatmul.mubr.msk.f32.gmra.mrb[2].mxu1 %vm2261_vm4, %v2587_v51  ;;  %v2894_v32 = vpop.permute.xlu1 %2893 }
 0x1ed   : > { %4205 = vmatpush3.bf16.msra.mxu0 %v5540_v61  ;;  %3969 = vmatprep.mubr.msk.f32.mxu0 %vm2261_vm4, %v2249_v63  ;;  %v2590_v61 = vld [vmem:[%s6153_s5 + $0x30] sm:$0xff] }
 0x1ee   : > { %4207 = vmatprep.subr.bf16.mxu0 %v5757_v12  ;;  %4025 = vmatprep.mubr.msk.f32.mxu1 %vm2261_vm4, %v2588_v46 }
 0x1f0   : > { %3970 = vmatmul.mubr.msk.f32.gmra.mrb[4].mxu0 %vm2261_vm4, %v2250_v36  ;;  %4026 = vmatmul.mubr.msk.f32.gmra.mrb[4].mxu1 %vm2261_vm4, %v2589_v21  ;;  %v3240_v40 = vpop.permute.xlu1 %3239 }
 0x1f1   : > { %4209 = vmatpush3.bf16.msra.mxu0 %v5757_v12  ;;  %3972 = vmatprep.mubr.msk.f32.mxu0 %vm2261_vm4, %v2251_v19  ;;  %v2939_v12 = vld [vmem:[#allocation3 + $0x8] sm:$0xff] }
 0x1f2   : > { %4211 = vmatprep.subr.bf16.mxu0 %v5800_v49  ;;  %4028 = vmatprep.mubr.msk.f32.mxu1 %vm2261_vm4, %v2590_v61 }
 0x1f4   : > { %3973 = vmatmul.mubr.msk.f32.gmra.mrb[6].mxu0 %vm2261_vm4, %v2252_v48  ;;  %4029 = vmatmul.mubr.msk.f32.gmra.mrb[6].mxu1 %vm2261_vm4, %v2591_v9  ;;  %v2566_v21 = vpop.permute.xlu1 %2565 }
 0x1f5   : > { %4213 = vmatpush3.bf16.msra.mxu0 %v5800_v49  ;;  %4047 = vmatprep.mubr.msk.f32.mxu0 %vm2261_vm4, %v2938_v5  ;;  %v2541_v49 = vpop.permute.xlu0 %2540 }
 0x1f6   : > { %4215 = vmatprep.subr.bf16.mxu0 %v5533_v52  ;;  %4103 = vmatprep.mubr.msk.f32.mxu1 %vm2261_vm4, %v3284_v55 }
 0x1f8   : > { %4048 = vmatmul.mubr.msk.f32.vlgmr.msra.gmra.mrb[8].mxu0 %vm2261_vm4, %v2939_v12 }
 0x1f9   : > { %4217 = vmatpush3.bf16.msra.mxu0 %v5533_v52  ;;  %4050 = vmatprep.mubr.msk.f32.mxu0 %vm2261_vm4, %v2940_v16  ;;  %v2945_v52 = vld [vmem:[#allocation3 + $0x38] sm:$0xff]  ;;  %v2879_v15 = vpop.permute.xlu0 %2878 }
 0x1fa   : > { %4219 = vmatprep.subr.bf16.mxu0 %v5428_v41 }
 0x1fc   : > { %4051 = vmatmul.mubr.msk.f32.gmra.mrb[10].mxu0 %vm2261_vm4, %v2941_v8  ;;  %v2904_v8 = vpop.permute.xlu1 %2903 }
 0x1fd   : > { %4221 = vmatpush3.bf16.msra.mxu0 %v5428_v41  ;;  %4053 = vmatprep.mubr.msk.f32.mxu0 %vm2261_vm4, %v2942_v25  ;;  %v2931_v41 = vld [vmem:[%s6156_s8 + $0x8] sm:$0xff]  ;;  %v6009_v18 = vpop.permute.xlu0 %3224 }
 0x1fe   : > { %4223 = vmatprep.subr.bf16.mxu0 %v5760_v6 }
 0x200   : > { %4054 = vmatmul.mubr.msk.f32.gmra.mrb[12].mxu0 %vm2261_vm4, %v2943_v47 }
 0x201   : > { %4225 = vmatpush3.bf16.msra.mxu0 %v5760_v6  ;;  %4056 = vmatprep.mubr.msk.f32.mxu0 %vm2261_vm4, %v2944_v38  ;;  %v2932_v6 = vld [vmem:[%s6156_s8 + $0x10] sm:$0xff]  ;;  %v2551_v39 = vpop.permute.xlu0 %2550 }
 0x202   : > { %4227 = vmatprep.subr.bf16.mxu0 %v5858_v30 }
 0x204   : > { %4057 = vmatmul.mubr.msk.f32.gmra.mrb[14].mxu0 %vm2261_vm4, %v2945_v52 }
 0x205   : > { %4229 = vmatpush3.bf16.msra.mxu0 %v5858_v30  ;;  %4075 = vmatprep.mubr.msk.f32.mxu0 %vm2261_vm4, %v2930_v10  ;;  %v2889_v59 = vpop.permute.xlu0 %2888 }
 0x208   : > { %4076 = vmatmul.mubr.msk.f32.vlgmr.msra.gmra.mrb[8].mxu0 %vm2261_vm4, %v2931_v41 }
 0x209   : > { %4078 = vmatprep.mubr.msk.f32.mxu0 %vm2261_vm4, %v2932_v6  ;;  %v3235_v63 = vpop.permute.xlu0 %3234 }
 0x20c   : > { %4079 = vmatmul.mubr.msk.f32.gmra.mrb[10].mxu0 %vm2261_vm4, %v2933_v29 }
 0x20d   : > { %4081 = vmatprep.mubr.msk.f32.mxu0 %vm2261_vm4, %v2934_v53  ;;  %v2561_v5 = vpop.permute.xlu0 %2560 }
 0x210   : > { %4082 = vmatmul.mubr.msk.f32.gmra.mrb[12].mxu0 %vm2261_vm4, %v2935_v1 }
 0x211   : > { %4084 = vmatprep.mubr.msk.f32.mxu0 %vm2261_vm4, %v2936_v34  ;;  %v2899_v34 = vpop.permute.xlu0 %2898 }
 0x214   : > { %4085 = vmatmul.mubr.msk.f32.gmra.mrb[14].mxu0 %vm2261_vm4, %v2937_v57 }
 0x2bb   : > { %v3965_v45 = vpop.f32.mrb[0].mxu0  ;;  %v4021_v56 = vpop.f32.mrb[0].mxu1 }
 0x2bc   : > { %v2481_v35 = vpop.f32.mrb[1].mxu0  ;;  %v2819_v42 = vpop.f32.mrb[1].mxu1  ;;  %v2569_v17 = vadd.f32 %v3965_v45, %v2536_v22  ;;  %v2907_v58 = vadd.f32 %v4021_v56, %v2874_v60 }
 0x2bd   : > { %v2568_v2 = vadd.f32 %v2531_v26, %v2481_v35  ;;  %v2906_v11 = vadd.f32 %v2869_v27, %v2819_v42  ;;  %v3250_v42 = vpop.permute.xlu1 %3249 }
 0x2be   : > { %4420 = vtanh.f32 %v2569_v17 }
 0x2bf   : > { %v3968_v31 = vpop.f32.mrb[2].mxu0  ;;  %v4024_v23 = vpop.f32.mrb[2].mxu1  ;;  %4422 = vtanh.f32 %v2907_v58 }
 0x2c0   : > { %v2491_v62 = vpop.f32.mrb[3].mxu0  ;;  %v2829_v7 = vpop.f32.mrb[3].mxu1  ;;  %v2571_v43 = vadd.f32 %v3968_v31, %v2546_v37  ;;  %v2909_v51 = vadd.f32 %v4024_v23, %v2884_v14  ;;  %4424 = vtanh.f32 %v2568_v2 }
 0x2c1   : > { %v2570_v46 = vadd.f32 %v2541_v49, %v2491_v62  ;;  %4426 = vtanh.f32 %v2906_v11  ;;  %v2908_v36 = vadd.f32 %v2879_v15, %v2829_v7  ;;  %v3245_v62 = vpop.permute.xlu0 %3244 }
 0x2c2   : > { %4428 = vtanh.f32 %v2571_v43 }
 0x2c3   : > { %v3971_v13 = vpop.f32.mrb[4].mxu0  ;;  %v4027_v0 = vpop.f32.mrb[4].mxu1  ;;  %4430 = vtanh.f32 %v2909_v51 }
 0x2c4   : > { %v2501_v33 = vpop.f32.mrb[5].mxu0  ;;  %v2839_v20 = vpop.f32.mrb[5].mxu1  ;;  %v2573_v19 = vadd.f32 %v3971_v13, %v2556_v50  ;;  %v2911_v61 = vadd.f32 %v4027_v0, %v2894_v32  ;;  %4432 = vtanh.f32 %v2570_v46 }
 0x2c5   : > { %v2572_v48 = vadd.f32 %v2551_v39, %v2501_v33  ;;  %4434 = vtanh.f32 %v2908_v36  ;;  %v2910_v9 = vadd.f32 %v2889_v59, %v2839_v20 }
 0x2c6   : > { %4436 = vtanh.f32 %v2573_v19 }
 0x2c7   : > { %v3974_v30 = vpop.f32.mrb[6].mxu0  ;;  %v4030_v3 = vpop.f32.mrb[6].mxu1  ;;  %4438 = vtanh.f32 %v2911_v61 }
 0x2c8   : > { %v2511_v54 = vpop.f32.mrb[7].mxu0  ;;  %v2849_v44 = vpop.f32.mrb[7].mxu1  ;;  %4440 = vtanh.f32 %v2572_v48  ;;  %v2575_v25 = vadd.f32 %v3974_v30, %v2566_v21  ;;  %v2913_v10 = vadd.f32 %v4030_v3, %v2904_v8 }
 0x2c9   : > { %v6011_v16 = vpop.eup %4420  ;;  %4442 = vtanh.f32 %v2910_v9  ;;  %v2574_v57 = vadd.f32 %v2561_v5, %v2511_v54  ;;  %v2912_v60 = vadd.f32 %v2899_v34, %v2849_v44 }
 0x2ca   : > { %v4423_v52 = vpop.eup %4422 }
 0x2cb   : > { %v6014_v6 = vpop.eup %4424  ;;  %v6027_v31 = vsub.f32 %v4423_v52, %v6011_v16 }
 0x2cc   : > { %v4427_v29 = vpop.eup %4426 }
 0x2cd   : > { %v6016_v1 = vpop.eup %4428  ;;  %v6030_v13 = vsub.f32 %v4427_v29, %v6014_v6 }
 0x2ce   : > { %v4431_v26 = vpop.eup %4430 }
 0x2cf   : > { %v6038_v44 = vsub.f32 %v4431_v26, %v6016_v1  ;;  %v3287_v26 = vld [vmem:[#allocation6 + $0x18] sm:$0xff] }
 0x2db   : > { %v4077_v12 = vpop.f32.mrb[8].mxu0 }
 0x2dc   : > { %v3253_v47 = vadd.f32 %v4077_v12, %v3220_v24  ;;  %v3165_v38 = vpop.f32.mrb[9].mxu0  ;;  %v6020_v24 = vpop.eup %4432 }
 0x2dd   : > { %v3252_v41 = vadd.f32 %v6005_v28, %v3165_v38  ;;  %v4435_v28 = vpop.eup %4434 }
 0x2de   : > { %4444 = vtanh.f32 %v3253_v47  ;;  %v6022_v49 = vpop.eup %4436  ;;  %v6042_v17 = vsub.f32 %v4435_v28, %v6020_v24  ;;  %v3290_v28 = vld [vmem:[#allocation6 + $0x30] sm:$0xff] }
 0x2df   : > { %4446 = vtanh.f32 %v3252_v41  ;;  %v4080_v53 = vpop.f32.mrb[10].mxu0  ;;  %v4439_v45 = vpop.eup %4438 }
 0x2e0   : > { %4448 = vtanh.f32 %v2575_v25  ;;  %v3255_v55 = vadd.f32 %v4080_v53, %v6007_v4  ;;  %v3175_v22 = vpop.f32.mrb[11].mxu0  ;;  %v6024_v56 = vpop.eup %4440  ;;  %v6050_v46 = vsub.f32 %v4439_v45, %v6022_v49 }
 0x2e1   : > { %4450 = vtanh.f32 %v2913_v10  ;;  %v3254_v27 = vadd.f32 %v6009_v18, %v3175_v22  ;;  %v4443_v35 = vpop.eup %4442  ;;  %v3286_v22 = vld [vmem:[#allocation6 + $0x10] sm:$0xff]  ;;  %v3308_v45 = vpop.permute.xlu1 %3307 }
 0x2e2   : > { %4452 = vtanh.f32 %v3255_v55  ;;  %v6054_v19 = vsub.f32 %v4443_v35, %v6024_v56  ;;  %v3285_v55 = vld [vmem:[#allocation6 + $0x8] sm:$0xff] }
 0x2e3   : > { %4454 = vtanh.f32 %v3254_v27  ;;  %v4083_v37 = vpop.f32.mrb[12].mxu0  ;;  %v3289_v27 = vld [vmem:[#allocation6 + $0x28] sm:$0xff] }
 0x2e4   : > { %4456 = vtanh.f32 %v2574_v57  ;;  %v3257_v14 = vadd.f32 %v4083_v37, %v3240_v40  ;;  %v3185_v15 = vpop.f32.mrb[13].mxu0  ;;  %v3291_v37 = vld [vmem:[#allocation6 + $0x38] sm:$0xff] }
 0x2e5   : > { %4458 = vtanh.f32 %v2912_v60  ;;  %v3256_v4 = vadd.f32 %v3235_v63, %v3185_v15  ;;  %v3288_v60 = vld [vmem:[#allocation6 + $0x20] sm:$0xff]  ;;  %v4626_v15 = vmov 0.0   ;;  %v3318_v35 = vpop.permute.xlu1 %3317 }
 0x2e6   : > { %4460 = vtanh.f32 %v3257_v14  ;;  %v4624_v14 = vmov 0.0|0.0  }
 0x2e7   : > { %4462 = vtanh.f32 %v3256_v4  ;;  %v4086_v18 = vpop.f32.mrb[14].mxu0  ;;  %v3303_v4 = vpop.permute.xlu0 %3302 }
 0x2e8   : > { %v4445_v23 = vpop.eup %4444  ;;  %v3259_v7 = vadd.f32 %v4086_v18, %v3250_v42  ;;  %v3195_v50 = vpop.f32.mrb[15].mxu0 }
 0x2e9   : > { %v4447_v0 = vpop.eup %4446  ;;  %v3258_v33 = vadd.f32 %v3245_v62, %v3195_v50  ;;  %v3269_v20 = vmul.f32 %v4445_v23, %v6027_v31 }
 0x2ea   : > { %v6033_v39 = vpop.eup %4448  ;;  %4464 = vtanh.f32 %v3259_v7  ;;  %v3268_v30 = vmul.f32 %v4447_v0, %v6030_v13 }
 0x2eb   : > { %v4451_v3 = vpop.eup %4450  ;;  %4466 = vtanh.f32 %v3258_v33  ;;  %v3277_v54 = vadd.f32 %v6011_v16, %v3269_v20  ;;  %v3313_v18 = vpop.permute.xlu0 %3312 }
 0x2ec   : > { %v4453_v32 = vpop.eup %4452  ;;  %v3276_v59 = vadd.f32 %v6014_v6, %v3268_v30  ;;  %v6060_v8 = vsub.f32 %v4451_v3, %v6033_v39  ;;  %v3328_v20 = vpop.permute.xlu1 %3327 }
 0x2ed   : > { %v4455_v58 = vpop.eup %4454  ;;  %v3271_v40 = vmul.f32 %v4453_v32, %v6038_v44 }
 0x2ee   : > { %v6045_v2 = vpop.eup %4456  ;;  %v4230_v11 = vpack.c.bf16 %v3277_v54, %v3276_v59  ;;  %v3270_v43 = vmul.f32 %v4455_v58, %v6042_v17 }
 0x2ef   : > { %v4459_v51 = vpop.eup %4458  ;;  %v3279_v63 = vadd.f32 %v6016_v1, %v3271_v40  ;;  %v3323_v3 = vpop.permute.xlu0 %3322 }
 0x2f0   : > { %v4461_v36 = vpop.eup %4460  ;;  %4231 = vmatprep.subr.bf16.mxu1 %v4230_v11  ;;  %v3278_v21 = vadd.f32 %v6020_v24, %v3270_v43  ;;  %v6064_v38 = vsub.f32 %v4459_v51, %v6045_v2  ;;  %v3338_v40 = vpop.permute.xlu1 %3337 }
 0x2f1   : > { %v4463_v61 = vpop.eup %4462  ;;  %4233 = vmatpush3.bf16.msra.mxu1 %v4230_v11  ;;  %v3273_v48 = vmul.f32 %v4461_v36, %v6050_v46 }
 0x2f2   : > { %v4234_v9 = vpack.c.bf16 %v3279_v63, %v3278_v21  ;;  %v3272_v5 = vmul.f32 %v4463_v61, %v6054_v19 }
 0x2f3   : > { %v3281_v12 = vadd.f32 %v6022_v49, %v3273_v48  ;;  %v3333_v51 = vpop.permute.xlu0 %3332 }
 0x2f4   : > { %v4465_v25 = vpop.eup %4464  ;;  %4235 = vmatprep.subr.bf16.mxu1 %v4234_v9  ;;  %v3280_v47 = vadd.f32 %v6024_v56, %v3272_v5 }
 0x2f5   : > { %v4467_v52 = vpop.eup %4466  ;;  %4237 = vmatpush3.bf16.msra.mxu1 %v4234_v9  ;;  %v3275_v10 = vmul.f32 %v4465_v25, %v6060_v8 }
 0x2f6   : > { %v4238_v41 = vpack.c.bf16 %v3281_v12, %v3280_v47  ;;  %v3274_v29 = vmul.f32 %v4467_v52, %v6064_v38 }
 0x2f7   : > { %v3283_v53 = vadd.f32 %v6033_v39, %v3275_v10 }
 0x2f8   : > { %4239 = vmatprep.subr.bf16.mxu1 %v4238_v41  ;;  %v3282_v34 = vadd.f32 %v6045_v2, %v3274_v29 }
 0x2f9   : > { %4241 = vmatpush3.bf16.msra.mxu1 %v4238_v41 }
 0x2fa   : > { %v4242_v57 = vpack.c.bf16 %v3283_v53, %v3282_v34 }
 0x2fc   : > { %4243 = vmatprep.subr.bf16.mxu1 %v4242_v57 }
 0x2fd   : > { %4245 = vmatpush3.bf16.msra.mxu1 %v4242_v57 }
 0x2fe   : > { %4246 = vmatprep.subr.bf16.mxu1 %v4624_v14 }
 0x300   : > { %4104 = vmatmul.mubr.msk.f32.vlgmr.msra.gmra.mrb[8].mxu1 %vm2261_vm4, %v3285_v55 }
 0x301   : > { %4106 = vmatprep.mubr.msk.f32.mxu1 %vm2261_vm4, %v3286_v22 }
 0x304   : > { %4107 = vmatmul.mubr.msk.f32.gmra.mrb[10].mxu1 %vm2261_vm4, %v3287_v26 }
 0x305   : > { %4109 = vmatprep.mubr.msk.f32.mxu1 %vm2261_vm4, %v3288_v60  ;;  %v3498_v60 = vpop.permute.xlu0 %3497 }
 0x308   : > { %4110 = vmatmul.mubr.msk.f32.gmra.mrb[12].mxu1 %vm2261_vm4, %v3289_v27 }
 0x309   : > { %4112 = vmatprep.mubr.msk.f32.mxu1 %vm2261_vm4, %v3290_v28 }
 0x30c   : > { %4113 = vmatmul.mubr.msk.f32.gmra.mrb[14].mxu1 %vm2261_vm4, %v3291_v37 }
 0x30d   : > { %4131 = vmatprep.mubr.msk.f32.mxu1 %vm4625_vm6, %v4626_v15 }
 0x3d3   : > { %v4105_v42 = vpop.f32.mrb[8].mxu1 }
 0x3d4   : > { %v3436_v23 = vadd.f32 %v4105_v42, %v3308_v45  ;;  %v3430_v62 = vpop.f32.mrb[9].mxu1 }
 0x3d5   : > { %v3431_v7 = vadd.f32 %v3430_v62, %v3303_v4 }
 0x3d6   : > { %4468 = vtanh.f32 %v3436_v23 }
 0x3d7   : > { %4470 = vtanh.f32 %v3431_v7  ;;  %v4108_v50 = vpop.f32.mrb[10].mxu1 }
 0x3d8   : > { %v3446_v0 = vadd.f32 %v4108_v50, %v3318_v35  ;;  %v3440_v33 = vpop.f32.mrb[11].mxu1 }
 0x3d9   : > { %v3441_v30 = vadd.f32 %v3440_v33, %v3313_v18 }
 0x3da   : > { %4472 = vtanh.f32 %v3446_v0 }
 0x3db   : > { %4474 = vtanh.f32 %v3441_v30  ;;  %v4111_v54 = vpop.f32.mrb[12].mxu1 }
 0x3dc   : > { %v3456_v32 = vadd.f32 %v4111_v54, %v3328_v20  ;;  %v3450_v59 = vpop.f32.mrb[13].mxu1 }
 0x3dd   : > { %v3451_v58 = vadd.f32 %v3450_v59, %v3323_v3 }
 0x3de   : > { %4476 = vtanh.f32 %v3456_v32 }
 0x3df   : > { %4478 = vtanh.f32 %v3451_v58  ;;  %v4114_v11 = vpop.f32.mrb[14].mxu1 }
 0x3e0   : > { %v4469_v43 = vpop.eup %4468  ;;  %v3466_v63 = vadd.f32 %v4114_v11, %v3338_v40  ;;  %v3460_v36 = vpop.f32.mrb[15].mxu1 }
 0x3e1   : > { %v4471_v21 = vpop.eup %4470  ;;  %v3461_v61 = vadd.f32 %v3460_v36, %v3333_v51  ;;  %v3478_v48 = vmul.f32 %v4469_v43, %v6027_v31 }
 0x3e2   : > { %4480 = vtanh.f32 %v3466_v63  ;;  %v3477_v9 = vmul.f32 %v4471_v21, %v6030_v13 }
 0x3e3   : > { %4482 = vtanh.f32 %v3461_v61  ;;  %v3486_v5 = vadd.f32 %v6011_v16, %v3478_v48 }
 0x3e4   : > { %v4473_v12 = vpop.eup %4472  ;;  %v3485_v25 = vadd.f32 %v6014_v6, %v3477_v9 }
 0x3e5   : > { %v4475_v47 = vpop.eup %4474  ;;  %v3480_v52 = vmul.f32 %v4473_v12, %v6038_v44 }
 0x3e6   : > { %v4247_v10 = vpack.c.bf16 %v3486_v5, %v3485_v25  ;;  %v3479_v41 = vmul.f32 %v4475_v47, %v6042_v17 }
 0x3e7   : > { %v3488_v29 = vadd.f32 %v6016_v1, %v3480_v52 }
 0x3e8   : > { %v4477_v53 = vpop.eup %4476  ;;  %4248 = vmatpush3.bf16.msra.mxu1 %v4247_v10  ;;  %v3487_v31 = vadd.f32 %v6020_v24, %v3479_v41 }
 0x3e9   : > { %v4479_v34 = vpop.eup %4478  ;;  %4249 = vmatprep.subr.bf16.mxu1 %v4624_v14  ;;  %v3482_v16 = vmul.f32 %v4477_v53, %v6050_v46 }
 0x3ea   : > { %v4250_v13 = vpack.c.bf16 %v3488_v29, %v3487_v31  ;;  %v3481_v6 = vmul.f32 %v4479_v34, %v6054_v19 }
 0x3eb   : > { %v3490_v57 = vadd.f32 %v6022_v49, %v3482_v16 }
 0x3ec   : > { %v4481_v44 = vpop.eup %4480  ;;  %4251 = vmatpush3.bf16.msra.mxu1 %v4250_v13  ;;  %v3489_v17 = vadd.f32 %v6024_v56, %v3481_v6  ;;  %v3493_v56 = vld [vmem:[%s6161_s13] sm:$0x1] }
 0x3ed   : > { %v4483_v1 = vpop.eup %4482  ;;  %4252 = vmatprep.subr.bf16.mxu1 %v4624_v14  ;;  %v3484_v24 = vmul.f32 %v4481_v44, %v6060_v8  ;;  %v3500_v8 = vlaneseq }
 0x3ee   : > { %v4253_v55 = vpack.c.bf16 %v3490_v57, %v3489_v17  ;;  %v3483_v22 = vmul.f32 %v4483_v1, %v6064_v38 }
 0x3ef   : > { %v3492_v46 = vadd.f32 %v6033_v39, %v3484_v24  ;;  %v3501_v26 = vshrl.u32 %v3500_v8, 7 }
 0x3f0   : > { %4254 = vmatpush3.bf16.msra.mxu1 %v4253_v55  ;;  %v3491_v19 = vadd.f32 %v6045_v2, %v3483_v22 }
 0x3f1   : > { %4255 = vmatprep.subr.bf16.mxu1 %v4624_v14  ;;  %v3502_v38 = vsub.s32 0, %v3501_v26 }
 0x3f2   : > { %v4256_v49 = vpack.c.bf16 %v3492_v46, %v3491_v19 }
 0x3f3   : > { %v3503_v39 = vrot.slane %v3498_v60, %v3502_v38 }
 0x3f4   : > { %4257 = vmatpush3.bf16.msra.mxu1 %v4256_v49 }
 0x3f7   : > { %4132 = vmatmul.mubr.msk.f32.vlgmr.msra.gmra.mrb[16].mxu1 %vm2261_vm4, %v3493_v56 }
 0x4ca   : > { %v3573_v2 = vpop.f32.mrb[16].mxu1 }
 0x4cb   : > { %v3574_v27 = vadd.f32 %v3573_v2, %v3503_v39  ;;  %v4133_v28 = vpop.f32.mrb[17].mxu1 }
 0x4cd   : > { %3577 = vst [vmem:[%s514_s25] sm:$0x1] %v3574_v27 }
 0x4ce   : > { %4554 = shalt.err (!%p4551_p11)
}
 0x4cf   : > { %s4555_s23 = scalar_lea.hbm %s6106_s27, 16  ;;  %s4559_s26 = scalar_lea.hbm %s6208_s30, 32 }
 0x4d0   : > { %p4556_p13 = scmp.ne.s32.totalorder %s6106_s27, %s4555_s23  ;;  %p4560_p6 = scmp.lt.u32.totalorder %s6106_s27, %s6208_s30 }
 0x4d1   : > { %p4561_p9 = scmp.lt.u32.totalorder %s4559_s26, %s4555_s23  ;;  %p4563_p10 = scmp.lt.u32.totalorder %s4555_s23, %s6106_s27 }
 0x4d2   : > { %p4557_p5 = pnand %p4556_p13, %p6209_p1 }
 0x4d3   : > { %p4562_p12 = por %p4561_p9, %p4560_p6 }
 0x4d4   : > { %p4558_p0 = pneg %p4557_p5 }
 0x4d5   : > { %p4564_p2 = por %p4563_p10, %p4562_p12 }
 0x4d7   : > { %p4565_p3 = pnand %p4564_p2, %p4558_p0 }
 0x4d9   : > { %4568 = shalt.err (!%p4565_p3)
}
 0x4da   : > { %4322 = dma.vmem_to_hbm [thread:$0]  (%p6209_p1), %s6108_s28, 16, %s6106_s27, %s3579_s17  }
 0x4db PF: > { %s6210_s22 = sld [smem:[#allocation14_spill]]  ;;  %s6211_s24 = sld [smem:[#allocation12_spill]] }
 0x4dc   : > { %s6212_s14 = sld [smem:[#allocation18_spill]] }
 0x4e1   : > { %p4339_p4 = scmp.ge.s32.totalorder %s6210_s22, 2  ;;  %s3603_s18 = sand.u32 1, %s6211_s24  }
 0x4e2   : > { %p6213_p7 = scmp.ne.s32.totalorder %s6212_s14, 0  ;;  %s3604_s15 = scalar_lea.sflag [#allocation5], %s3603_s18 }
 0x4e4   : > { %p4332_p8 = pnand %p4339_p4, %p6213_p7 }
 0x4e6   : > { %4594 = dma.done.wait (!%p4332_p8), %s3604_s15, 16  }
 0x4e7   : > { %4596 = vsyncadd (!%p4332_p8), %s3604_s15, 4294967280  ;;  %s6214_s23 = sld [smem:[#allocation15_spill]]  ;;  %s6215_s29 = sld [smem:[#allocation13_spill]] }
 0x4e8   : > { %s6216_s22 = sld [smem:[#allocation16_spill]]  ;;  %s6217_s20 = smov %s4603_s21 }
 0x4ed   : > { %p29_p11 = scmp.ge.s32.totalorder %s6214_s23, 4   ;;  %s6218_s21 = smov %s6215_s29 }
 0x4ef   :  { %31 = sbr.rel (!%p29_p11) target bundleno = 8 (0x8), region = 124 }
 0x4f6   :  { %3608 = vsyncpa [#allocation4], 1 }
 0x4f7   :  { %3610 = vsyncpa [#allocation4 + $0x1], 1 }
 0x4f8   :  { %3611 = vsyncpa [#allocation7], 1 }
 0x4f9   :  { %3612 = vsyncpa [#allocation5], 1 }
 0x4fa   :  { %3614 = vsyncpa [#allocation5 + $0x1], 1 }

</bundles_post_ra>
